<compile_context>
chip_gen: v7x
topology: tpu7x:2x2x1
jax: 0.10.0
libtpu: 0.0.40
codegen_flags: <defaults>
</compile_context>

<pallas_src>
import functools

import jax
import jax.numpy as jnp
from jax.experimental import pallas as pl
from jax.experimental.pallas import tpu as pltpu


def _round_up(x, m):
    return ((x + m - 1) // m) * m


def _sigmoid(x):
    # single EUP tanh instead of exp + divide
    return 0.5 * jnp.tanh(0.5 * x) + 0.5


def _softplus(x):
    # numerically stable softplus
    return jnp.maximum(x, 0.0) + jnp.log1p(jnp.exp(-jnp.abs(x)))


def actor_kernel(A1, A2,
                 tr_ref, x_ref, h0_ref,
                 w1_ref, b1_ref,
                 wi3_ref, bi3_ref,
                 wh3_ref, bh3_ref,
                 whd_ref, bhd_ref,
                 heads_ref, hall_ref,
                 h_scr):
    HP = h_scr.shape[1]                      # padded hidden width (multiple of 128)

    # t == 0 for this batch block: load the initial hidden state into the carry scratch.
    @pl.when(pl.program_id(1) == 0)
    def _():
        h_scr[...] = h0_ref[...]

    turn_range = tr_ref[0]
    x = x_ref[0]                             # (Bb, D_in)
    h = h_scr[...]                           # (Bb, HP)

    # fc1 + relu (output lanes padded to HP; padded weight cols/bias are zero -> relu(0)=0)
    a1 = jnp.maximum(
        jnp.dot(x, w1_ref[...], preferred_element_type=jnp.float32) + b1_ref[...], 0.0)

    # GRUCell (PyTorch semantics), gates packed [ r | z | n ], each padded to HP lanes.
    #   bi3 = [b_ir + b_hr | b_iz + b_hz | b_in]
    #   bh3 = [     0      |      0      | b_hn]   (b_hn must sit inside the r * (...) term)
    gi = jnp.dot(a1, wi3_ref[...], preferred_element_type=jnp.float32) + bi3_ref[...]
    gh = jnp.dot(h, wh3_ref[...], preferred_element_type=jnp.float32) + bh3_ref[...]

    r = _sigmoid(gi[:, 0:HP] + gh[:, 0:HP])
    z = _sigmoid(gi[:, HP:2 * HP] + gh[:, HP:2 * HP])
    n = jnp.tanh(gi[:, 2 * HP:3 * HP] + r * gh[:, 2 * HP:3 * HP])
    h_new = (1.0 - z) * n + z * h            # padded lanes stay exactly 0

    h_scr[...] = h_new
    hall_ref[0] = h_new                      # full 128-lane store

    # fused heads: [ mu | std | logits | zero-pad ] in one matmul, one 128-lane tile
    heads = jnp.dot(h_new, whd_ref[...],
                    preferred_element_type=jnp.float32) + bhd_ref[...]

    Bb, HEAD_P = heads.shape
    col = jax.lax.broadcasted_iota(jnp.int32, (Bb, HEAD_P), 1)
    mu_mask = col < A1
    std_mask = (col >= A1) & (col < 2 * A1)
    logit_mask = (col >= 2 * A1) & (col < 2 * A1 + A2)

    mu = turn_range * jnp.tanh(heads)
    std = _softplus(heads)

    neg_big = jnp.float32(-1e30)
    logits = jnp.where(logit_mask, heads, neg_big)
    m = jnp.max(logits, axis=-1, keepdims=True)
    e = jnp.where(logit_mask, jnp.exp(logits - m), 0.0)
    # exact reciprocal: a2 feeds importance ratios / log-probs in IPPO
    a2 = e / jnp.sum(e, axis=-1, keepdims=True)

    heads_ref[0] = jnp.where(mu_mask, mu, jnp.where(std_mask, std, a2))


def pack_params(params, hidden_dim, action_dims):
    """One-time host-side packing of per-layer weights into lane-aligned fused slabs."""
    H = hidden_dim
    A1, A2 = action_dims
    HP = _round_up(H, 128)
    HEAD_P = _round_up(2 * A1 + A2, 128)

    def pad_cols(w, out):
        return jnp.pad(w, ((0, 0), (0, out - w.shape[1])))

    def pad_rc(w, rows, cols):
        return jnp.pad(w, ((0, rows - w.shape[0]), (0, cols - w.shape[1])))

    zeros_b = jnp.zeros((1, HP), jnp.float32)

    wi3 = jnp.concatenate([pad_rc(params["w_ir"], HP, HP),
                           pad_rc(params["w_iz"], HP, HP),
                           pad_rc(params["w_in"], HP, HP)], axis=1)
    bi3 = jnp.concatenate([pad_cols(params["b_ir"] + params["b_hr"], HP),
                           pad_cols(params["b_iz"] + params["b_hz"], HP),
                           pad_cols(params["b_in"], HP)], axis=1)
    wh3 = jnp.concatenate([pad_rc(params["w_hr"], HP, HP),
                           pad_rc(params["w_hz"], HP, HP),
                           pad_rc(params["w_hn"], HP, HP)], axis=1)
    bh3 = jnp.concatenate([zeros_b, zeros_b, pad_cols(params["b_hn"], HP)], axis=1)

    w_heads = jnp.concatenate([params["w_mu"], params["w_std"], params["w_a2"]], axis=1)
    b_heads = jnp.concatenate([params["b_mu"], params["b_std"], params["b_a2"]], axis=1)

    return {
        "w1": pad_cols(params["w1"], HP),
        "b1": pad_cols(params["b1"], HP),
        "wi3": wi3, "bi3": bi3,
        "wh3": wh3, "bh3": bh3,
        "w_heads": pad_rc(w_heads, HP, HEAD_P),
        "b_heads": pad_cols(b_heads, HEAD_P),
    }


def actor_rollout(packed, inputs, h0, turn_range, hidden_dim, action_dims,
                  batch_block=None):
    """Rollout over T timesteps in a single pallas_call.

    inputs: (T, B, D_in) float32, h0: (B, H) float32.
    Returns mu (T,B,A1), std (T,B,A1), action2 (T,B,A2), h (T,B,H).
    """
    T, B, D = inputs.shape
    H = hidden_dim
    A1, A2 = action_dims
    HP = packed["wi3"].shape[0]
    HEAD_P = packed["w_heads"].shape[1]

    if batch_block is None:
        # fill MXU rows when batch is large; stay small otherwise
        batch_block = min(_round_up(B, 8), 256)
    Bp = _round_up(B, batch_block)
    nb = Bp // batch_block

    x = inputs.astype(jnp.float32)
    if Bp != B:
        x = jnp.pad(x, ((0, 0), (0, Bp - B), (0, 0)))
    hp = jnp.pad(h0.astype(jnp.float32), ((0, Bp - B), (0, HP - H)))
    tr = jnp.full((1,), turn_range, jnp.float32)

    const2 = lambda b, t: (0, 0)   # weights: same block every grid step -> DMA'd once

    heads_all, h_all = pl.pallas_call(
        functools.partial(actor_kernel, A1, A2),
        grid=(nb, T),
        in_specs=[
            pl.BlockSpec(memory_space=pltpu.MemorySpace.SMEM),             # turn_range
            pl.BlockSpec((1, batch_block, D), lambda b, t: (t, b, 0)),     # x (one step)
            pl.BlockSpec((batch_block, HP), lambda b, t: (b, 0)),          # h0
            pl.BlockSpec((D, HP), const2),                                 # w1
            pl.BlockSpec((1, HP), const2),                                 # b1
            pl.BlockSpec((HP, 3 * HP), const2),                            # wi3
            pl.BlockSpec((1, 3 * HP), const2),                             # bi3
            pl.BlockSpec((HP, 3 * HP), const2),                            # wh3
            pl.BlockSpec((1, 3 * HP), const2),                             # bh3
            pl.BlockSpec((HP, HEAD_P), const2),                            # w_heads
            pl.BlockSpec((1, HEAD_P), const2),                             # b_heads
        ],
        out_specs=(
            pl.BlockSpec((1, batch_block, HEAD_P), lambda b, t: (t, b, 0)),
            pl.BlockSpec((1, batch_block, HP), lambda b, t: (t, b, 0)),
        ),
        out_shape=(
            jax.ShapeDtypeStruct((T, Bp, HEAD_P), jnp.float32),   # [mu|std|a2|pad]
            jax.ShapeDtypeStruct((T, Bp, HP), jnp.float32),       # h_out (padded lanes = 0)
        ),
        scratch_shapes=[pltpu.VMEM((batch_block, HP), jnp.float32)],       # hidden carry
        compiler_params=pltpu.CompilerParams(
            dimension_semantics=("parallel", "arbitrary")),
    )(tr, x, hp,
      packed["w1"], packed["b1"],
      packed["wi3"], packed["bi3"],
      packed["wh3"], packed["bh3"],
      packed["w_heads"], packed["b_heads"])

    mu = heads_all[:, :B, :A1]
    std = heads_all[:, :B, A1:2 * A1]
    a2 = heads_all[:, :B, 2 * A1:2 * A1 + A2]
    h_out = h_all[:, :B, :H]
    return mu, std, a2, h_out


def actor_forward(packed, inputs, h_in, turn_range, hidden_dim, action_dims):
    """Single-step forward matching the PyTorch module signature."""
    mu, std, a2, h = actor_rollout(packed, inputs[None], h_in, turn_range,
                                   hidden_dim, action_dims)
    return mu[0], std[0], a2[0], h[0]


# ----------------------------------------------------------------------------- reference

def init_params(key, input_dim, hidden_dim, action_dims):
    """Deterministic synthetic parameters (PyTorch weights transposed to [in, out])."""
    def nxt():
        nonlocal key
        key, sub = jax.random.split(key)
        return sub

    def lin(in_d, out_d):
        w = jax.random.uniform(nxt(), (in_d, out_d), jnp.float32, -0.1, 0.1)
        b = jax.random.uniform(nxt(), (1, out_d), jnp.float32, -0.1, 0.1)
        return w, b

    p = {}
    p["w1"], p["b1"] = lin(input_dim, hidden_dim)
    p["w_ir"], p["b_ir"] = lin(hidden_dim, hidden_dim)
    p["w_iz"], p["b_iz"] = lin(hidden_dim, hidden_dim)
    p["w_in"], p["b_in"] = lin(hidden_dim, hidden_dim)
    p["w_hr"], p["b_hr"] = lin(hidden_dim, hidden_dim)
    p["w_hz"], p["b_hz"] = lin(hidden_dim, hidden_dim)
    p["w_hn"], p["b_hn"] = lin(hidden_dim, hidden_dim)
    p["w_mu"], p["b_mu"] = lin(hidden_dim, action_dims[0])
    p["w_std"], p["b_std"] = lin(hidden_dim, action_dims[0])
    p["w_a2"], p["b_a2"] = lin(hidden_dim, action_dims[1])
    return p


def actor_forward_ref(params, inputs, h_in, turn_range):
    """Pure-JAX reference mirroring the PyTorch module (single step)."""
    a1 = jax.nn.relu(inputs @ params["w1"] + params["b1"])
    r = jax.nn.sigmoid(a1 @ params["w_ir"] + params["b_ir"] + h_in @ params["w_hr"] + params["b_hr"])
    z = jax.nn.sigmoid(a1 @ params["w_iz"] + params["b_iz"] + h_in @ params["w_hz"] + params["b_hz"])
    n = jnp.tanh(a1 @ params["w_in"] + params["b_in"] + r * (h_in @ params["w_hn"] + params["b_hn"]))
    h_out = (1.0 - z) * n + z * h_in
    mu = turn_range * jnp.tanh(h_out @ params["w_mu"] + params["b_mu"])
    std = jax.nn.softplus(h_out @ params["w_std"] + params["b_std"])
    a2 = jax.nn.softmax(h_out @ params["w_a2"] + params["b_a2"], axis=-1)
    return mu, std, a2, h_out


def actor_rollout_ref(params, inputs, h0, turn_range):
    def step(h, x):
        mu, std, a2, h = actor_forward_ref(params, x, h, turn_range)
        return h, (mu, std, a2, h)
    _, outs = jax.lax.scan(step, h0, inputs)
    return outs


if __name__ == "__main__":
    # small shapes consistent with the module's forward
    T = 8
    batch = 8
    actor_input_dim_C = 32
    hidden_dim = 32
    action_dim_Cannon = (4, 8)
    turn_range = 3.0

    key = jax.random.PRNGKey(0)
    kp, kx, kh = jax.random.split(key, 3)
    params = init_params(kp, actor_input_dim_C, hidden_dim, action_dim_Cannon)
    inputs = jax.random.normal(kx, (T, batch, actor_input_dim_C), jnp.float32)
    h0 = jax.random.normal(kh, (batch, hidden_dim), jnp.float32)

    packed = pack_params(params, hidden_dim, action_dim_Cannon)

    mu, std, a2, h_out = actor_rollout(packed, inputs, h0, turn_range,
                                       hidden_dim, action_dim_Cannon)
    jax.block_until_ready((mu, std, a2, h_out))

    # sanity check against pure-JAX reference over the whole rollout
    mu_r, std_r, a2_r, h_r = actor_rollout_ref(params, inputs, h0, turn_range)
    assert jnp.allclose(mu, mu_r, atol=2e-4), "mu mismatch"
    assert jnp.allclose(std, std_r, atol=2e-4), "std mismatch"
    assert jnp.allclose(a2, a2_r, atol=2e-4), "action2 mismatch"
    assert jnp.allclose(h_out, h_r, atol=2e-4), "h_out mismatch"

    # single-step API (matches the PyTorch module forward signature)
    mu1, std1, a21, h1 = actor_forward(packed, inputs[0], h0, turn_range,
                                       hidden_dim, action_dim_Cannon)
    jax.block_until_ready((mu1, std1, a21, h1))
    assert jnp.allclose(h1, h_r[0], atol=2e-4), "single-step h mismatch"

    print("KERNEL_OK")
</pallas_src>

<mosaic_0001>
module attributes {stable_mosaic.version = 11 : i64} {
  func.func @actor_kernel(%arg0: i32, %arg1: i32, %arg2: memref<1xf32, #tpu.memory_space<smem>>, %arg3: memref<1x8x32xf32, #tpu.memory_space<vmem>>, %arg4: memref<8x128xf32, #tpu.memory_space<vmem>>, %arg5: memref<32x128xf32, #tpu.memory_space<vmem>>, %arg6: memref<1x128xf32, #tpu.memory_space<vmem>>, %arg7: memref<128x384xf32, #tpu.memory_space<vmem>>, %arg8: memref<1x384xf32, #tpu.memory_space<vmem>>, %arg9: memref<128x384xf32, #tpu.memory_space<vmem>>, %arg10: memref<1x384xf32, #tpu.memory_space<vmem>>, %arg11: memref<128x128xf32, #tpu.memory_space<vmem>>, %arg12: memref<1x128xf32, #tpu.memory_space<vmem>>, %arg13: memref<1x8x128xf32, #tpu.memory_space<vmem>>, %arg14: memref<1x8x128xf32, #tpu.memory_space<vmem>>, %arg15: memref<8x128xf32, #tpu.memory_space<vmem>>) attributes {dimension_semantics = [#tpu.dimension_semantics<parallel>, #tpu.dimension_semantics<arbitrary>], iteration_bounds = array<i64: 1, 8>, scalar_prefetch = 0 : i64, scratch_operands = 1 : i64, tpu.core_type = #tpu.core_type<tc>, window_params = [{transform_indices = @transform_0, window_bounds = array<i64: 1>}, {transform_indices = @transform_1, window_bounds = array<i64: 1, 8, 32>}, {transform_indices = @transform_2, window_bounds = array<i64: 8, 128>}, {pipeline_mode = #tpu.pipeline_mode<synchronous>, transform_indices = @transform_3, window_bounds = array<i64: 32, 128>}, {pipeline_mode = #tpu.pipeline_mode<synchronous>, transform_indices = @transform_4, window_bounds = array<i64: 1, 128>}, {pipeline_mode = #tpu.pipeline_mode<synchronous>, transform_indices = @transform_5, window_bounds = array<i64: 128, 384>}, {pipeline_mode = #tpu.pipeline_mode<synchronous>, transform_indices = @transform_6, window_bounds = array<i64: 1, 384>}, {pipeline_mode = #tpu.pipeline_mode<synchronous>, transform_indices = @transform_7, window_bounds = array<i64: 128, 384>}, {pipeline_mode = #tpu.pipeline_mode<synchronous>, transform_indices = @transform_8, window_bounds = array<i64: 1, 384>}, {pipeline_mode = #tpu.pipeline_mode<synchronous>, transform_indices = @transform_9, window_bounds = array<i64: 128, 128>}, {pipeline_mode = #tpu.pipeline_mode<synchronous>, transform_indices = @transform_10, window_bounds = array<i64: 1, 128>}, {transform_indices = @transform_11, window_bounds = array<i64: 1, 8, 128>}, {transform_indices = @transform_12, window_bounds = array<i64: 1, 8, 128>}]} {
    %c0_i32 = arith.constant 0 : i32
    %0 = arith.cmpi eq, %arg1, %c0_i32 : i32
    %1 = arith.extui %0 : i1 to i32
    %c0_i32_0 = arith.constant 0 : i32
    %2 = arith.cmpi ne, %1, %c0_i32_0 : i32
    scf.if %2 {
      %c0_49 = arith.constant 0 : index
      %c0_50 = arith.constant 0 : index
      %105 = vector.load %arg4[%c0_49, %c0_50] : memref<8x128xf32, #tpu.memory_space<vmem>>, vector<8x128xf32>
      %c0_51 = arith.constant 0 : index
      %c0_52 = arith.constant 0 : index
      %106 = vector.load %arg15[%c0_51, %c0_52] : memref<8x128xf32, #tpu.memory_space<vmem>>, vector<8x128xf32>
      tpu.vector_store %arg15[%c0_51, %c0_52], %105 {strides = array<i32>} : memref<8x128xf32, #tpu.memory_space<vmem>>, vector<8x128xf32>,
    } else {
    }
    %c0 = arith.constant 0 : index
    %3 = memref.load %arg2[%c0] : memref<1xf32, #tpu.memory_space<smem>>
    %c0_1 = arith.constant 0 : index
    %c0_2 = arith.constant 0 : index
    %c0_3 = arith.constant 0 : index
    %4 = vector.load %arg3[%c0_1, %c0_2, %c0_3] : memref<1x8x32xf32, #tpu.memory_space<vmem>>, vector<1x8x32xf32>
    %5 = vector.shape_cast %4 : vector<1x8x32xf32> to vector<8x32xf32>
    %c0_4 = arith.constant 0 : index
    %c0_5 = arith.constant 0 : index
    %6 = vector.load %arg15[%c0_4, %c0_5] : memref<8x128xf32, #tpu.memory_space<vmem>>, vector<8x128xf32>
    %c0_6 = arith.constant 0 : index
    %c0_7 = arith.constant 0 : index
    %7 = vector.load %arg5[%c0_6, %c0_7] : memref<32x128xf32, #tpu.memory_space<vmem>>, vector<32x128xf32>
    %cst = arith.constant dense<0.000000e+00> : vector<8x128xf32>
    %8 = tpu.matmul %5, %7, %cst {dimension_numbers = #tpu.dot_dimension_numbers<[1], [0], [0], [1], [0, 0, 1, 1], [], []>} : vector<8x32xf32>, vector<32x128xf32>, vector<8x128xf32> -> vector<8x128xf32>
    %c0_8 = arith.constant 0 : index
    %c0_9 = arith.constant 0 : index
    %9 = vector.load %arg6[%c0_8, %c0_9] : memref<1x128xf32, #tpu.memory_space<vmem>>, vector<1x128xf32>
    %10 = vector.broadcast %9 : vector<1x128xf32> to vector<8x128xf32>
    %11 = arith.addf %8, %10 : vector<8x128xf32>
    %cst_10 = arith.constant 0.000000e+00 : f32
    %12 = vector.broadcast %cst_10 : f32 to vector<8x128xf32>
    %13 = arith.maximumf %11, %12 : vector<8x128xf32>
    %c0_11 = arith.constant 0 : index
    %c0_12 = arith.constant 0 : index
    %14 = vector.load %arg7[%c0_11, %c0_12] : memref<128x384xf32, #tpu.memory_space<vmem>>, vector<128x384xf32>
    %cst_13 = arith.constant dense<0.000000e+00> : vector<8x384xf32>
    %15 = tpu.matmul %13, %14, %cst_13 {dimension_numbers = #tpu.dot_dimension_numbers<[1], [0], [0], [1], [0, 0, 1, 1], [], []>} : vector<8x128xf32>, vector<128x384xf32>, vector<8x384xf32> -> vector<8x384xf32>
    %c0_14 = arith.constant 0 : index
    %c0_15 = arith.constant 0 : index
    %16 = vector.load %arg8[%c0_14, %c0_15] : memref<1x384xf32, #tpu.memory_space<vmem>>, vector<1x384xf32>
    %17 = vector.broadcast %16 : vector<1x384xf32> to vector<8x384xf32>
    %18 = arith.addf %15, %17 : vector<8x384xf32>
    %c0_16 = arith.constant 0 : index
    %c0_17 = arith.constant 0 : index
    %19 = vector.load %arg9[%c0_16, %c0_17] : memref<128x384xf32, #tpu.memory_space<vmem>>, vector<128x384xf32>
    %cst_18 = arith.constant dense<0.000000e+00> : vector<8x384xf32>
    %20 = tpu.matmul %6, %19, %cst_18 {dimension_numbers = #tpu.dot_dimension_numbers<[1], [0], [0], [1], [0, 0, 1, 1], [], []>} : vector<8x128xf32>, vector<128x384xf32>, vector<8x384xf32> -> vector<8x384xf32>
    %c0_19 = arith.constant 0 : index
    %c0_20 = arith.constant 0 : index
    %21 = vector.load %arg10[%c0_19, %c0_20] : memref<1x384xf32, #tpu.memory_space<vmem>>, vector<1x384xf32>
    %22 = vector.broadcast %21 : vector<1x384xf32> to vector<8x384xf32>
    %23 = arith.addf %20, %22 : vector<8x384xf32>
    %24 = vector.extract_strided_slice %18 {offsets = [0, 0], sizes = [8, 128], strides = [1, 1]} : vector<8x384xf32> to vector<8x128xf32>
    %25 = vector.extract_strided_slice %23 {offsets = [0, 0], sizes = [8, 128], strides = [1, 1]} : vector<8x384xf32> to vector<8x128xf32>
    %26 = arith.addf %24, %25 : vector<8x128xf32>
    %cst_21 = arith.constant 5.000000e-01 : f32
    %27 = vector.broadcast %cst_21 : f32 to vector<8x128xf32>
    %28 = arith.mulf %27, %26 : vector<8x128xf32>
    %29 = math.tanh %28 : vector<8x128xf32>
    %cst_22 = arith.constant 5.000000e-01 : f32
    %30 = vector.broadcast %cst_22 : f32 to vector<8x128xf32>
    %31 = arith.mulf %30, %29 : vector<8x128xf32>
    %cst_23 = arith.constant 5.000000e-01 : f32
    %32 = vector.broadcast %cst_23 : f32 to vector<8x128xf32>
    %33 = arith.addf %31, %32 : vector<8x128xf32>
    %34 = vector.extract_strided_slice %18 {offsets = [0, 128], sizes = [8, 128], strides = [1, 1]} : vector<8x384xf32> to vector<8x128xf32>
    %35 = vector.extract_strided_slice %23 {offsets = [0, 128], sizes = [8, 128], strides = [1, 1]} : vector<8x384xf32> to vector<8x128xf32>
    %36 = arith.addf %34, %35 : vector<8x128xf32>
    %cst_24 = arith.constant 5.000000e-01 : f32
    %37 = vector.broadcast %cst_24 : f32 to vector<8x128xf32>
    %38 = arith.mulf %37, %36 : vector<8x128xf32>
    %39 = math.tanh %38 : vector<8x128xf32>
    %cst_25 = arith.constant 5.000000e-01 : f32
    %40 = vector.broadcast %cst_25 : f32 to vector<8x128xf32>
    %41 = arith.mulf %40, %39 : vector<8x128xf32>
    %cst_26 = arith.constant 5.000000e-01 : f32
    %42 = vector.broadcast %cst_26 : f32 to vector<8x128xf32>
    %43 = arith.addf %41, %42 : vector<8x128xf32>
    %44 = vector.extract_strided_slice %18 {offsets = [0, 256], sizes = [8, 128], strides = [1, 1]} : vector<8x384xf32> to vector<8x128xf32>
    %45 = vector.extract_strided_slice %23 {offsets = [0, 256], sizes = [8, 128], strides = [1, 1]} : vector<8x384xf32> to vector<8x128xf32>
    %46 = arith.mulf %33, %45 : vector<8x128xf32>
    %47 = arith.addf %44, %46 : vector<8x128xf32>
    %48 = math.tanh %47 : vector<8x128xf32>
    %cst_27 = arith.constant 1.000000e+00 : f32
    %49 = vector.broadcast %cst_27 : f32 to vector<8x128xf32>
    %50 = arith.subf %49, %43 : vector<8x128xf32>
    %51 = arith.mulf %50, %48 : vector<8x128xf32>
    %52 = arith.mulf %43, %6 : vector<8x128xf32>
    %53 = arith.addf %51, %52 : vector<8x128xf32>
    %c0_28 = arith.constant 0 : index
    %c0_29 = arith.constant 0 : index
    %54 = vector.load %arg15[%c0_28, %c0_29] : memref<8x128xf32, #tpu.memory_space<vmem>>, vector<8x128xf32>
    tpu.vector_store %arg15[%c0_28, %c0_29], %53 {strides = array<i32>} : memref<8x128xf32, #tpu.memory_space<vmem>>, vector<8x128xf32>,
    %c0_30 = arith.constant 0 : index
    %c0_31 = arith.constant 0 : index
    %c0_32 = arith.constant 0 : index
    %55 = vector.load %arg14[%c0_30, %c0_31, %c0_32] : memref<1x8x128xf32, #tpu.memory_space<vmem>>, vector<1x8x128xf32>
    %56 = vector.shape_cast %55 : vector<1x8x128xf32> to vector<8x128xf32>
    %57 = vector.shape_cast %53 : vector<8x128xf32> to vector<1x8x128xf32>
    tpu.vector_store %arg14[%c0_30, %c0_31, %c0_32], %57 {strides = array<i32>} : memref<1x8x128xf32, #tpu.memory_space<vmem>>, vector<1x8x128xf32>,
    %c0_33 = arith.constant 0 : index
    %c0_34 = arith.constant 0 : index
    %58 = vector.load %arg11[%c0_33, %c0_34] : memref<128x128xf32, #tpu.memory_space<vmem>>, vector<128x128xf32>
    %cst_35 = arith.constant dense<0.000000e+00> : vector<8x128xf32>
    %59 = tpu.matmul %53, %58, %cst_35 {dimension_numbers = #tpu.dot_dimension_numbers<[1], [0], [0], [1], [0, 0, 1, 1], [], []>} : vector<8x128xf32>, vector<128x128xf32>, vector<8x128xf32> -> vector<8x128xf32>
    %c0_36 = arith.constant 0 : index
    %c0_37 = arith.constant 0 : index
    %60 = vector.load %arg12[%c0_36, %c0_37] : memref<1x128xf32, #tpu.memory_space<vmem>>, vector<1x128xf32>
    %61 = vector.broadcast %60 : vector<1x128xf32> to vector<8x128xf32>
    %62 = arith.addf %59, %61 : vector<8x128xf32>
    %63 = tpu.iota {dimensions = array<i32: 1>} : vector<8x128xi32>
    %c4_i32 = arith.constant 4 : i32
    %64 = vector.broadcast %c4_i32 : i32 to vector<8x128xi32>
    %65 = arith.cmpi slt, %63, %64 : vector<8x128xi32>
    %c4_i32_38 = arith.constant 4 : i32
    %66 = vector.broadcast %c4_i32_38 : i32 to vector<8x128xi32>
    %67 = arith.cmpi sge, %63, %66 : vector<8x128xi32>
    %c8_i32 = arith.constant 8 : i32
    %68 = vector.broadcast %c8_i32 : i32 to vector<8x128xi32>
    %69 = arith.cmpi slt, %63, %68 : vector<8x128xi32>
    %70 = arith.andi %67, %69 : vector<8x128xi1>
    %c8_i32_39 = arith.constant 8 : i32
    %71 = vector.broadcast %c8_i32_39 : i32 to vector<8x128xi32>
    %72 = arith.cmpi sge, %63, %71 : vector<8x128xi32>
    %c16_i32 = arith.constant 16 : i32
    %73 = vector.broadcast %c16_i32 : i32 to vector<8x128xi32>
    %74 = arith.cmpi slt, %63, %73 : vector<8x128xi32>
    %75 = arith.andi %72, %74 : vector<8x128xi1>
    %76 = math.tanh %62 : vector<8x128xf32>
    %77 = vector.broadcast %3 : f32 to vector<8x128xf32>
    %78 = arith.mulf %77, %76 : vector<8x128xf32>
    %cst_40 = arith.constant 0.000000e+00 : f32
    %79 = vector.broadcast %cst_40 : f32 to vector<8x128xf32>
    %80 = arith.maximumf %62, %79 : vector<8x128xf32>
    %81 = math.absf %62 : vector<8x128xf32>
    %cst_41 = arith.constant 0.000000e+00 : f32
    %82 = vector.broadcast %cst_41 : f32 to vector<8x128xf32>
    %83 = arith.subf %82, %81 : vector<8x128xf32>
    %84 = math.exp %83 : vector<8x128xf32>
    %85 = math.log1p %84 : vector<8x128xf32>
    %86 = arith.addf %80, %85 : vector<8x128xf32>
    %cst_42 = arith.constant -1.000000e+30 : f32
    %87 = vector.broadcast %cst_42 : f32 to vector<8x128xf32>
    %88 = arith.select %75, %62, %87 : vector<8x128xi1>, vector<8x128xf32>
    %cst_43 = arith.constant dense<0xFF800000> : vector<8xf32>
    %89 = vector.multi_reduction <maximumf>, %88, %cst_43 [1] : vector<8x128xf32> to vector<8xf32>
    %90 = vector.shape_cast %89 : vector<8xf32> to vector<8x1xf32>
    %91 = vector.broadcast %90 : vector<8x1xf32> to vector<8x128xf32>
    %92 = arith.subf %88, %91 : vector<8x128xf32>
    %93 = math.exp %92 : vector<8x128xf32>
    %cst_44 = arith.constant 0.000000e+00 : f32
    %94 = vector.broadcast %cst_44 : f32 to vector<8x128xf32>
    %95 = arith.select %75, %93, %94 : vector<8x128xi1>, vector<8x128xf32>
    %cst_45 = arith.constant dense<0.000000e+00> : vector<8xf32>
    %96 = vector.multi_reduction <add>, %95, %cst_45 [1] : vector<8x128xf32> to vector<8xf32>
    %97 = vector.shape_cast %96 : vector<8xf32> to vector<8x1xf32>
    %98 = vector.broadcast %97 : vector<8x1xf32> to vector<8x128xf32>
    %99 = arith.divf %95, %98 : vector<8x128xf32>
    %100 = arith.select %70, %86, %99 : vector<8x128xi1>, vector<8x128xf32>
    %101 = arith.select %65, %78, %100 : vector<8x128xi1>, vector<8x128xf32>
    %c0_46 = arith.constant 0 : index
    %c0_47 = arith.constant 0 : index
    %c0_48 = arith.constant 0 : index
    %102 = vector.load %arg13[%c0_46, %c0_47, %c0_48] : memref<1x8x128xf32, #tpu.memory_space<vmem>>, vector<1x8x128xf32>
    %103 = vector.shape_cast %102 : vector<1x8x128xf32> to vector<8x128xf32>
    %104 = vector.shape_cast %101 : vector<8x128xf32> to vector<1x8x128xf32>
    tpu.vector_store %arg13[%c0_46, %c0_47, %c0_48], %104 {strides = array<i32>} : memref<1x8x128xf32, #tpu.memory_space<vmem>>, vector<1x8x128xf32>,
    return
  }
  func.func @transform_0(%arg0: i32, %arg1: i32) -> i32 {
    %c0_i32 = arith.constant 0 : i32
    %c0_i32_0 = arith.constant 0 : i32
    return %c0_i32 : i32
  }
  func.func @transform_1(%arg0: i32, %arg1: i32) -> (i32, i32, i32) {
    %c0_i32 = arith.constant 0 : i32
    %c0_i32_0 = arith.constant 0 : i32
    return %arg1, %arg0, %c0_i32 : i32, i32, i32
  }
  func.func @transform_2(%arg0: i32, %arg1: i32) -> (i32, i32) {
    %c0_i32 = arith.constant 0 : i32
    %c0_i32_0 = arith.constant 0 : i32
    return %arg0, %c0_i32 : i32, i32
  }
  func.func @transform_3(%arg0: i32, %arg1: i32) -> (i32, i32) {
    %c0_i32 = arith.constant 0 : i32
    %c0_i32_0 = arith.constant 0 : i32
    %c0_i32_1 = arith.constant 0 : i32
    return %c0_i32, %c0_i32_0 : i32, i32
  }
  func.func @transform_4(%arg0: i32, %arg1: i32) -> (i32, i32) {
    %c0_i32 = arith.constant 0 : i32
    %c0_i32_0 = arith.constant 0 : i32
    %c0_i32_1 = arith.constant 0 : i32
    return %c0_i32, %c0_i32_0 : i32, i32
  }
  func.func @transform_5(%arg0: i32, %arg1: i32) -> (i32, i32) {
    %c0_i32 = arith.constant 0 : i32
    %c0_i32_0 = arith.constant 0 : i32
    %c0_i32_1 = arith.constant 0 : i32
    return %c0_i32, %c0_i32_0 : i32, i32
  }
  func.func @transform_6(%arg0: i32, %arg1: i32) -> (i32, i32) {
    %c0_i32 = arith.constant 0 : i32
    %c0_i32_0 = arith.constant 0 : i32
    %c0_i32_1 = arith.constant 0 : i32
    return %c0_i32, %c0_i32_0 : i32, i32
  }
  func.func @transform_7(%arg0: i32, %arg1: i32) -> (i32, i32) {
    %c0_i32 = arith.constant 0 : i32
    %c0_i32_0 = arith.constant 0 : i32
    %c0_i32_1 = arith.constant 0 : i32
    return %c0_i32, %c0_i32_0 : i32, i32
  }
  func.func @transform_8(%arg0: i32, %arg1: i32) -> (i32, i32) {
    %c0_i32 = arith.constant 0 : i32
    %c0_i32_0 = arith.constant 0 : i32
    %c0_i32_1 = arith.constant 0 : i32
    return %c0_i32, %c0_i32_0 : i32, i32
  }
  func.func @transform_9(%arg0: i32, %arg1: i32) -> (i32, i32) {
    %c0_i32 = arith.constant 0 : i32
    %c0_i32_0 = arith.constant 0 : i32
    %c0_i32_1 = arith.constant 0 : i32
    return %c0_i32, %c0_i32_0 : i32, i32
  }
  func.func @transform_10(%arg0: i32, %arg1: i32) -> (i32, i32) {
    %c0_i32 = arith.constant 0 : i32
    %c0_i32_0 = arith.constant 0 : i32
    %c0_i32_1 = arith.constant 0 : i32
    return %c0_i32, %c0_i32_0 : i32, i32
  }
  func.func @transform_11(%arg0: i32, %arg1: i32) -> (i32, i32, i32) {
    %c0_i32 = arith.constant 0 : i32
    %c0_i32_0 = arith.constant 0 : i32
    return %arg1, %arg0, %c0_i32 : i32, i32, i32
  }
  func.func @transform_12(%arg0: i32, %arg1: i32) -> (i32, i32, i32) {
    %c0_i32 = arith.constant 0 : i32
    %c0_i32_0 = arith.constant 0 : i32
    return %arg1, %arg0, %c0_i32 : i32, i32, i32
  }
}

</mosaic_0001>

<bundles_post_ra>
// kernel: tpu_custom_call.1
= control target key start
LH: loop header
LB: loop body
LE: loop exit
PB: predicated region body
PF: predicated region fallthrough
CT: control target
= control target key end

     0   :  { %s2696_s0 = inlined_call_operand.<no memory space> [shape: f32[1], index: 0, kind: input, shape index: {}]   ;;  %s2697_s1 = inlined_call_operand.hbm [shape: f32[8,8,32], index: 1, kind: input, shape index: {}]   ;;  %s2698_s2 = inlined_call_operand.hbm [shape: f32[8,128], index: 2, kind: input, shape index: {}]   ;;  %s2699_s3 = inlined_call_operand.hbm [shape: f32[32,128], index: 3, kind: input, shape index: {}]   ;;  %s2700_s4 = inlined_call_operand.vmem [shape: f32[1,128], index: 4, kind: input, shape index: {}]   ;;  %s2701_s5 = inlined_call_operand.hbm [shape: f32[128,384], index: 5, kind: input, shape index: {}]   ;;  %s2702_s6 = inlined_call_operand.vmem [shape: f32[1,384], index: 6, kind: input, shape index: {}]   ;;  %s2703_s7 = inlined_call_operand.hbm [shape: f32[128,384], index: 7, kind: input, shape index: {}]   ;;  %s2704_s8 = inlined_call_operand.vmem [shape: f32[1,384], index: 8, kind: input, shape index: {}]   ;;  %s2705_s9 = inlined_call_operand.hbm [shape: f32[128,128], index: 9, kind: input, shape index: {}]   ;;  %s2706_s10 = inlined_call_operand.vmem [shape: f32[1,128], index: 10, kind: input, shape index: {}]   ;;  %s2707_s11 = inlined_call_operand.hbm [shape: f32[8,8,128], index: 11, kind: output, shape index: {0}]   ;;  %s2708_s12 = inlined_call_operand.hbm [shape: f32[8,8,128], index: 12, kind: output, shape index: {1}]  }
   0x1   :  { %2718 = sst [smem:[#allocation24_spill]] %s2698_s2 }
   0x2   :  { %2719 = sst [smem:[#allocation25_spill]] %s2701_s5 }
   0x3   :  { %2720 = sst [smem:[#allocation26_spill]] %s2702_s6 }
   0x4   :  { %2721 = sst [smem:[#allocation27_spill]] %s2704_s8 }
   0x5   :  { %2722 = sst [smem:[#allocation28_spill]] %s2706_s10 }
   0x6   :  { %2723 = sst [smem:[#allocation29_spill]] %s2707_s11 }
   0x7   :  { %2724 = sst [smem:[#allocation30_spill]] %s2708_s12 }
   0x8   :  { %18 = sst [smem:[#allocation3]] %s2696_s0 }
   0x9   :  { %19 = vsyncpa [#allocation5], 0 }
   0xa   :  { %21 = vsyncpa [#allocation5 + $0x1], 0 }
   0xb   :  { %22 = vsyncpa [#allocation8], 0 }
   0xc   :  { %23 = vsyncpa [#allocation11], 0 }
   0xd   :  { %24 = vsyncpa [#allocation14], 0 }
   0xe   :  { %25 = vsyncpa [#allocation6], 0 }
   0xf   :  { %27 = vsyncpa [#allocation6 + $0x1], 0 }
  0x10   :  { %28 = vsyncpa [#allocation17], 0 }
  0x11   :  { %30 = vsyncpa [#allocation17 + $0x1], 0  ;;  %s2267_s23 = smov 0   ;;  %s2269_s24 = smov 0  }
  0x12   :  { %s2271_s25 = smov 0   ;;  %s2273_s26 = smov 0  }
  0x13   :  { %s2275_s27 = smov 0   ;;  %s2277_s0 = smov 0  }
  0x14 LB: > { %s2709_s28 = sadd.s32 4294967295, %s2182_s0   ;;  %p1397_p0 = scmp.ge.s32.totalorder %s2182_s0, 1  ;;  %s2182_s0 = sphi %s2277_s0, %s36_s0   ;;  %s2178_s27 = sphi %s2275_s27, %s2753_s27   ;;  %s2174_s26 = sphi %s2273_s26, %s2752_s26   ;;  %s2170_s25 = sphi %s2271_s25, %s2751_s25   ;;  %s2166_s24 = sphi %s2269_s24, %s2750_s24   ;;  %s2162_s23 = sphi %s2267_s23, %s2749_s23  }
  0x15   : > { %p2301_p1 = scmp.eq.s32.totalorder %s2709_s28, 0  ;;  %p352_p2 = scmp.lt.s32.totalorder %s2182_s0, 9 }
  0x16   : > { %s2184_s13 = smov [#allocation7]   ;;  %s2185_s15 = smov [#allocation10]  }
  0x17   : > { %s2725_s29 = scalar_select %p2301_p1, 1, 0 }
  0x18   : > { %p2306_p3 = pnand %p1397_p0, %p352_p2  ;;  %s370_s14 = sshll.u32 %s2184_s13, 4  ;;  %s371_s14 = int_to_ptr.vmem [resolvable:$true] %s370_s14 }
  0x19   : > { %s396_s16 = sshll.u32 %s2185_s15, 4  ;;  %s2186_s18 = smov [#allocation9]   ;;  %s2318_s16 = int_to_ptr.vmem [resolvable:$true] %s396_s16 }
  0x1a   : > { %s2726_s30 = scalar_select %p2306_p3, 1, 0 }
  0x1b   : > { %p1771_p4 = pneg %p2306_p3  ;;  %s2320_s19 = sshll.u32 %s2186_s18, 4  ;;  %s381_s19 = int_to_ptr.vmem [resolvable:$true] %s2320_s19 }
  0x1c   : > { %s2728_s2 = sld [smem:[#allocation24_spill]] }
  0x1d   : > { %p2314_p5 = pnand %p1771_p4, %p2301_p1 }
  0x1f   : > { %p2330_p7 = pneg %p2314_p5 }
  0x22   : > { %s1886_s22 = scalar_lea.hbm %s2728_s2, 128 }
  0x23   : > { %p1887_p6 = scmp.ne.s32.totalorder %s2728_s2, %s1886_s22  ;;  %p1893_p10 = scmp.lt.u32.totalorder %s1886_s22, %s2728_s2 }
  0x25   : > { %p1889_p8 = pnand %p2330_p7, %p1887_p6 }
  0x27   : > { %p1890_p9 = pneg %p1889_p8 }
  0x29   : > { %p1895_p11 = pnand %p1893_p10, %p1890_p9 }
  0x2b   : > { %1898 = shalt.err (!%p1895_p11)
}
  0x2c   : > { %s1899_s20 = scalar_lea.vmem %s371_s14, 128  ;;  %p1907_p2 = scmp.lt.s32.totalorder %s371_s14, %s371_s14 }
  0x2d   : > { %p1900_p12 = scmp.ne.s32.totalorder %s371_s14, %s1899_s20  ;;  %p1908_p4 = scmp.lt.s32.totalorder %s1899_s20, %s1899_s20 }
  0x2f   : > { %p1902_p13 = pnand %p1900_p12, %p2330_p7  ;;  %p1909_p3 = por %p1908_p4, %p1907_p2 }
  0x31   : > { %p1903_p0 = pneg %p1902_p13 }
  0x33   : > { %p1910_p1 = pnand %p1909_p3, %p1903_p0 }
  0x35   : > { %1913 = shalt.err (!%p1910_p1)
}
  0x36   : > { %1774 = dma.hbm_to_vmem [thread:$0]  (!%p2314_p5), %s2728_s2, 128, %s371_s14, [#allocation8]  }
  0x37   : > { %s2730_s5 = sld [smem:[#allocation25_spill]] }
  0x3d   : > { %s1914_s13 = scalar_lea.hbm %s2730_s5, 6144 }
  0x3e   : > { %p1915_p6 = scmp.ne.s32.totalorder %s2730_s5, %s1914_s13  ;;  %p1921_p1 = scmp.lt.u32.totalorder %s1914_s13, %s2730_s5 }
  0x40   : > { %p1917_p8 = pnand %p1915_p6, %p2330_p7 }
  0x42   : > { %p1918_p9 = pneg %p1917_p8 }
  0x44   : > { %p1923_p3 = pnand %p1921_p1, %p1918_p9 }
  0x46   : > { %1926 = shalt.err (!%p1923_p3)
}
  0x47   : > { %s1927_s14 = scalar_lea.vmem %s2318_s16, 6144  ;;  %p1935_p13 = scmp.lt.s32.totalorder %s2318_s16, %s2318_s16 }
  0x48   : > { %p1928_p10 = scmp.ne.s32.totalorder %s2318_s16, %s1927_s14  ;;  %p1936_p0 = scmp.lt.s32.totalorder %s1927_s14, %s1927_s14 }
  0x4a   : > { %p1930_p11 = pnand %p1928_p10, %p2330_p7  ;;  %p1937_p2 = por %p1936_p0, %p1935_p13 }
  0x4c   : > { %p1931_p12 = pneg %p1930_p11 }
  0x4e   : > { %p1938_p4 = pnand %p1937_p2, %p1931_p12 }
  0x50   : > { %1941 = shalt.err (!%p1938_p4)
}
  0x51   : > { %s2715_s12 = smov 384   ;;  %s2716_s10 = smov 24  }
  0x52   : > { %1780 = dma.hbm_to_vmem [thread:$0]  (!%p2314_p5), %s2730_s5, 6144, %s2318_s16, [#allocation11], %s2715_s12, %s2715_s12, %s2716_s10  }
  0x53   : > { %s1942_s13 = scalar_lea.hbm %s2699_s3, 512 }
  0x54   : > { %p1943_p6 = scmp.ne.s32.totalorder %s2699_s3, %s1942_s13  ;;  %p1949_p1 = scmp.lt.u32.totalorder %s1942_s13, %s2699_s3 }
  0x56   : > { %p1945_p8 = pnand %p1943_p6, %p2330_p7 }
  0x58   : > { %p1946_p9 = pneg %p1945_p8 }
  0x5a   : > { %p1951_p3 = pnand %p1949_p1, %p1946_p9 }
  0x5c   : > { %1954 = shalt.err (!%p1951_p3)
}
  0x5d   : > { %s1955_s28 = scalar_lea.vmem %s381_s19, 512  ;;  %p1963_p13 = scmp.lt.s32.totalorder %s381_s19, %s381_s19 }
  0x5e   : > { %p1956_p10 = scmp.ne.s32.totalorder %s381_s19, %s1955_s28  ;;  %p1964_p0 = scmp.lt.s32.totalorder %s1955_s28, %s1955_s28 }
  0x60   : > { %p1958_p11 = pnand %p1956_p10, %p2330_p7  ;;  %p1965_p2 = por %p1964_p0, %p1963_p13 }
  0x62   : > { %p1959_p12 = pneg %p1958_p11 }
  0x64   : > { %p1966_p4 = pnand %p1965_p2, %p1959_p12 }
  0x66   : > { %1969 = shalt.err (!%p1966_p4)
}
  0x67   : > { %s2189_s16 = smov 128   ;;  %s2190_s21 = smov 8  }
  0x68   : > { %1777 = dma.hbm_to_vmem [thread:$0]  (!%p2314_p5), %s2699_s3, 512, %s381_s19, [#allocation8], %s2189_s16, %s2189_s16, %s2190_s21  }
  0x69   : > { %s2191_s22 = smov [#allocation12]   ;;  %s2192_s18 = smov [#allocation13]  }
  0x6a   : > { %s412_s13 = sshll.u32 %s2191_s22, 4  ;;  %s428_s20 = sshll.u32 %s2192_s18, 4  ;;  %s413_s13 = int_to_ptr.vmem [resolvable:$true] %s412_s13  ;;  %s429_s20 = int_to_ptr.vmem [resolvable:$true] %s428_s20 }
  0x6b   : > { %s1970_s12 = scalar_lea.hbm %s2703_s7, 6144 }
  0x6c   : > { %p1971_p6 = scmp.ne.s32.totalorder %s2703_s7, %s1970_s12  ;;  %p1977_p1 = scmp.lt.u32.totalorder %s1970_s12, %s2703_s7 }
  0x6e   : > { %p1973_p8 = pnand %p1971_p6, %p2330_p7 }
  0x70   : > { %p1974_p9 = pneg %p1973_p8 }
  0x72   : > { %p1979_p3 = pnand %p1977_p1, %p1974_p9 }
  0x74   : > { %1982 = shalt.err (!%p1979_p3)
}
  0x75   : > { %s1983_s19 = scalar_lea.vmem %s413_s13, 6144  ;;  %p1991_p13 = scmp.lt.s32.totalorder %s413_s13, %s413_s13 }
  0x76   : > { %p1984_p10 = scmp.ne.s32.totalorder %s413_s13, %s1983_s19  ;;  %p1992_p0 = scmp.lt.s32.totalorder %s1983_s19, %s1983_s19 }
  0x78   : > { %p1986_p11 = pnand %p1984_p10, %p2330_p7  ;;  %p1993_p2 = por %p1992_p0, %p1991_p13 }
  0x7a   : > { %p1987_p12 = pneg %p1986_p11 }
  0x7c   : > { %p1994_p4 = pnand %p1993_p2, %p1987_p12 }
  0x7e   : > { %1997 = shalt.err (!%p1994_p4)
}
  0x7f   : > { %s2731_s5 = smov 24   ;;  %s2732_s10 = smov 384  }
  0x80   : > { %1783 = dma.hbm_to_vmem [thread:$0]  (!%p2314_p5), %s2703_s7, 6144, %s413_s13, [#allocation11], %s2732_s10, %s2732_s10, %s2731_s5  }
  0x81   : > { %s1998_s11 = scalar_lea.hbm %s2705_s9, 2048 }
  0x82   : > { %p1999_p6 = scmp.ne.s32.totalorder %s2705_s9, %s1998_s11  ;;  %p2005_p1 = scmp.lt.u32.totalorder %s1998_s11, %s2705_s9 }
  0x84   : > { %p2001_p8 = pnand %p1999_p6, %p2330_p7 }
  0x86   : > { %p2002_p9 = pneg %p2001_p8 }
  0x88   : > { %p2007_p3 = pnand %p2005_p1, %p2002_p9 }
  0x8a   : > { %2010 = shalt.err (!%p2007_p3)
}
  0x8b   : > { %s2011_s19 = scalar_lea.vmem %s429_s20, 2048  ;;  %p2019_p13 = scmp.lt.s32.totalorder %s429_s20, %s429_s20 }
  0x8c   : > { %p2012_p10 = scmp.ne.s32.totalorder %s429_s20, %s2011_s19  ;;  %p2020_p0 = scmp.lt.s32.totalorder %s2011_s19, %s2011_s19 }
  0x8e   : > { %p2014_p11 = pnand %p2012_p10, %p2330_p7  ;;  %p2021_p2 = por %p2020_p0, %p2019_p13 }
  0x90   : > { %p2015_p12 = pneg %p2014_p11 }
  0x92   : > { %p2022_p4 = pnand %p2021_p2, %p2015_p12 }
  0x94   : > { %2025 = shalt.err (!%p2022_p4)
}
  0x95   : > { %1786 = dma.hbm_to_vmem [thread:$0]  (!%p2314_p5), %s2705_s9, 2048, %s429_s20, [#allocation14], %s2189_s16, %s2189_s16, %s2190_s21  }
  0x96   : > { %s1396_s17 = sadd.s32 4294967294, %s2182_s0   ;;  %s45_s15 = sadd.s32 1, %s2178_s27 }
  0x97   : > { %s78_s10 = sadd.s32 1, %s2170_s25  ;;  %p46_p7 = scmp.ge.s32.totalorder %s45_s15, 8 }
  0x98   : > { %p85_p6 = scmp.ne.s32.totalorder %s2170_s25, %s2166_s24  ;;  %p86_p8 = scmp.eq.s32.totalorder %s2182_s0, 0 }
  0x99   : > { %p91_p9 = scmp.ne.s32.totalorder %s2166_s24, %s2162_s23  ;;  %s2755_s15 = smov (%p46_p7, %s45_s15), 0 }
  0x9a   : > { %p2446_p1 = por %p86_p8, %p85_p6  ;;  %p2734_p3 = scmp.ne.s32.totalorder %s2725_s29, 0 }
  0x9b   : > { %s73_s21 = ssub.s32 %s2178_s27, %s2755_s15  ;;  %s2736_s20 = sadd.s32 4294967295, %s2182_s0  }
  0x9c   : > { %p2452_p5 = por %p2734_p3, %p91_p9  ;;  %p311_p10 = scmp.eq.s32.totalorder %s2736_s20, 7 }
  0x9d   : > { %p76_p11 = scmp.eq.s32.totalorder %s73_s21, 0  ;;  %p317_p12 = scmp.eq.s32.totalorder %s1396_s17, 7 }
  0x9e   : > { %p2460_p13 = por %p311_p10, %p85_p6  ;;  %p1803_p0 = scmp.lt.s32.totalorder %s2182_s0, 8 }
  0x9f   : > { %s2466_s12 = scalar_select %p76_p11, %s2170_s25, %s78_s10  }
  0xa0   : > { %s2737_s8 = scalar_select %p2460_p13, 1, 0 }
  0xa1   : > { %p2468_p2 = por %p317_p12, %p91_p9  ;;  %s445_s11 = sand.u32 1, %s2170_s25  }
  0xa2   : > { %s1404_s22 = sshll.u32 %s445_s11, 3  ;;  %s1405_s18 = sshll.u32 %s2178_s27, 7 }
  0xa3   : > { %s2738_s2 = scalar_select %p2468_p2, 1, 0 }
  0xa4   : > { %s2477_s19 = scalar_lea.hbm %s2697_s1, %s1405_s18  ;;  %s449_s13 = scalar_lea.vmem [#allocation4], %s1404_s22 }
  0xa5   : > { %s457_s5 = sshll.u32 %s449_s13, 4  ;;  %p2483_p4 = pnand %p1803_p0, %p2446_p1  ;;  %s2479_s5 = int_to_ptr.vmem [resolvable:$true] %s457_s5 }
  0xa6   : > { %s446_s10 = scalar_lea.sflag [#allocation5], %s445_s11  ;;  %s2026_s21 = scalar_lea.hbm %s2477_s19, 128 }
  0xa7   : > { %p2027_p7 = scmp.ne.s32.totalorder %s2477_s19, %s2026_s21  ;;  %p2028_p6 = pneg %p2483_p4 }
  0xa8   : > { %s2031_s18 = scalar_lea.hbm %s2697_s1, 1024  ;;  %p2032_p1 = scmp.lt.u32.totalorder %s2477_s19, %s2697_s1 }
  0xa9   : > { %p2029_p8 = pnand %p2028_p6, %p2027_p7  ;;  %p2033_p3 = scmp.lt.u32.totalorder %s2031_s18, %s2026_s21 }
  0xaa   : > { %p2035_p11 = scmp.lt.u32.totalorder %s2026_s21, %s2477_s19 }
  0xab   : > { %p2030_p9 = pneg %p2029_p8  ;;  %p2034_p10 = por %p2033_p3, %p2032_p1 }
  0xad   : > { %p2036_p12 = por %p2035_p11, %p2034_p10 }
  0xaf   : > { %p2037_p0 = pnand %p2036_p12, %p2030_p9 }
  0xb1   : > { %2040 = shalt.err (!%p2037_p0)
}
  0xb2   : > { %s2041_s11 = scalar_lea.vmem %s2479_s5, 128  ;;  %s2193_s28 = smov [#allocation4]  }
  0xb3   : > { %p2042_p7 = scmp.ne.s32.totalorder %s2479_s5, %s2041_s11  ;;  %s2046_s13 = sshll.u32 %s2193_s28, 4  ;;  %s2047_s13 = int_to_ptr.vmem [resolvable:$false] %s2046_s13 }
  0xb4   : > { %s2048_s20 = scalar_lea.vmem %s2047_s13, 256  ;;  %p2049_p13 = scmp.lt.s32.totalorder %s2479_s5, %s2047_s13 }
  0xb5   : > { %p2044_p8 = pnand %p2042_p7, %p2028_p6  ;;  %p2050_p1 = scmp.lt.s32.totalorder %s2048_s20, %s2041_s11 }
  0xb7   : > { %p2045_p2 = pneg %p2044_p8  ;;  %p2051_p3 = por %p2050_p1, %p2049_p13 }
  0xb9   : > { %p2052_p10 = pnand %p2051_p3, %p2045_p2 }
  0xbb   : > { %2055 = shalt.err (!%p2052_p10)
}
  0xbc   : > { %1790 = dma.hbm_to_vmem [thread:$0]  (!%p2483_p4), %s2477_s19, 128, %s2479_s5, %s446_s10  }
  0xbd   : > { %p2740_p9 = scmp.ne.s32.totalorder %s2726_s30, 0 }
  0xbe   : > { %s2515_s21 = sand.u32 (!%p2740_p9), 1, %s2166_s24  }
  0xbf   : > { %466 = sbr.rel (%p2740_p9) target bundleno = 1268 (0x4f4), region = 64  ;;  %s2518_s22 = sshll.u32 (!%p2740_p9), %s2515_s21, 3 }
  0xc0   : > { %s469_s18 = scalar_lea.sflag (!%p2740_p9), [#allocation5], %s2515_s21  ;;  %s472_s6 = scalar_lea.vmem (!%p2740_p9), [#allocation4], %s2518_s22 }
  0xc6   : > { %2137 = dma.done.wait (%p2452_p5), %s469_s18, 128  }
  0xc7   : > { %2139 = vsyncadd (%p2452_p5), %s469_s18, 4294967168  ;;  %p2741_p13 = scmp.ne.s32.totalorder %s2725_s29, 0 }
  0xc9   : > { %2141 = dma.done.wait (%p2741_p13), [#allocation8], 640  }
  0xca   : > { %2143 = vsyncadd (%p2741_p13), [#allocation8], 4294966656 }
  0xcb   : > { %2145 = dma.done.wait (%p2741_p13), [#allocation11], 12288  }
  0xcc   : > { %2147 = vsyncadd (%p2741_p13), [#allocation11], 4294955008 }
  0xcd   : > { %2149 = dma.done.wait (%p2741_p13), [#allocation14], 2048  }
  0xce   : > { %2151 = vsyncadd (%p2741_p13), [#allocation14], 4294965248  ;;  %s530_s30 = scalar_lea.vmem [#allocation15], %s2518_s22  ;;  %s537_s16 = scalar_lea.vmem [#allocation16], %s2518_s22 }
  0xcf   : > { %p1415_p5 = scmp.ne.s32.totalorder %s2174_s26, 0 }
  0xd0   : > { %v542_v0 = vld [vmem:[#allocation7] sm:$0xff] (!%p1415_p5) }
  0xd1   : > { %541 = sbr.rel (%p1415_p5) target bundleno = 216 (0xd8), region = 92  ;;  %543 = vst [vmem:[#allocation2] sm:$0xff] (!%p1415_p5), %v542_v0 }
  0xd8 PF: > { %v547_v1 = vld [vmem:[#allocation9] sm:$0xff]  ;;  %v548_v2 = vld [vmem:[#allocation9 + $0x8] sm:$0xff]  ;;  %v549_v3 = vld [vmem:[#allocation9 + $0x10] sm:$0xff]  ;;  %v2194_v4 = vmov 0.0|0.0   ;;  %vm2195_vm0 = vmmov 0   ;;  %v2196_v7 = vmov 0.0  }
  0xd9   : > { %1597 = vmatprep.subr.bf16.mxu0 %v2194_v4  ;;  %v1598_v5 = vpack.c.bf16 %v548_v2, %v547_v1  ;;  %v550_v6 = vld [vmem:[#allocation9 + $0x18] sm:$0xff]  ;;  %1489 = vmatprep.mubr.msk.f32.mxu0 %vm2195_vm0, %v2196_v7  ;;  %v634_v8 = vld [vmem:[#allocation10 + $0x8] sm:$0xff]  ;;  %v637_v9 = vld [vmem:[#allocation10 + $0x20] sm:$0xff]  ;;  %vm558_vm1 = vcmask 261120   ;;  %s2742_s10 = sld [smem:[#allocation27_spill]]  ;;  %s2743_s28 = sld [smem:[#allocation26_spill]] }
  0xda   : > { %v633_v10 = vld [vmem:[#allocation10] sm:$0xff]  ;;  %v636_v11 = vld [vmem:[#allocation10 + $0x18] sm:$0xff]  ;;  %762 = vmatprep.mubr.f32.mxu1 %v2196_v7  ;;  %v1601_v12 = vpack.c.bf16 %v550_v6, %v549_v3  ;;  %v1603_v13 = vpack.c.bf16 %v637_v9, %v634_v8  ;;  %v635_v15 = vld [vmem:[#allocation10 + $0x10] sm:$0xff]  ;;  %s2744_s18 = sld [smem:[#allocation28_spill]]  ;;  %s2745_s5 = sld [smem:[#allocation30_spill]] }
  0xdb   : > { %1599 = vmatpush3.bf16.msra.mxu0 %v1598_v5  ;;  %v1605_v14 = vpack.c.bf16 %v636_v11, %v633_v10  ;;  %v638_v16 = vld [vmem:[#allocation10 + $0x28] sm:$0xff]  ;;  %v640_v17 = vld [vmem:[#allocation10 + $0x38] sm:$0xff]  ;;  %v643_v18 = vld [vmem:[#allocation10 + $0x50] sm:$0xff]  ;;  %s1204_s14 = scalar_lea.sflag [#allocation17], %s2515_s21  ;;  %p2746_p4 = scmp.ne.s32.totalorder %s2737_s8, 0 }
  0xdc   : > { %1600 = vmatprep.subr.bf16.mxu0 %v2194_v4  ;;  %v639_v19 = vld [vmem:[#allocation10 + $0x30] sm:$0xff]  ;;  %v642_v20 = vld [vmem:[#allocation10 + $0x48] sm:$0xff]  ;;  %1604 = vmatprep.subr.bf16.mxu1 %v1603_v13  ;;  %v1607_v21 = vpack.c.bf16 %v643_v18, %v640_v17  ;;  %v649_v25 = vld [vmem:[#allocation10 + $0x80] sm:$0xff]  ;;  %v1636_v26 = vpack.c.bf16 %v638_v16, %v635_v15 }
  0xdd   : > { %v646_v22 = vld [vmem:[#allocation10 + $0x68] sm:$0xff]  ;;  %1606 = vmatpush1.bf16.msra.mxu1 %v1605_v14  ;;  %v1609_v24 = vpack.c.bf16 %v642_v20, %v639_v19  ;;  %v641_v27 = vld [vmem:[#allocation10 + $0x40] sm:$0xff]  ;;  %v648_v30 = vld [vmem:[#allocation10 + $0x78] sm:$0xff] }
  0xde   : > { %v545_v23 = vld [vmem:[%s472_s6] sm:$0xff]  ;;  %1608 = vmatprep.subr.bf16.mxu1 %v1607_v21  ;;  %v1611_v28 = vpack.c.bf16 %v649_v25, %v646_v22  ;;  %v645_v29 = vld [vmem:[#allocation10 + $0x60] sm:$0xff]  ;;  %v644_v31 = vld [vmem:[#allocation10 + $0x58] sm:$0xff]  ;;  %s1421_s6 = sshll.u32 %s2174_s26, 7 }
  0xdf   : > { %1602 = vmatpush3.bf16.msra.mxu0 %v1601_v12  ;;  %v652_v32 = vld [vmem:[#allocation10 + $0x98] sm:$0xff]  ;;  %v655_v33 = vld [vmem:[#allocation10 + $0xb0] sm:$0xff]  ;;  %v1613_v34 = vpack.c.bf16 %v648_v30, %v645_v29  ;;  %v1639_v35 = vpack.c.bf16 %v644_v31, %v641_v27  ;;  %v654_v39 = vld [vmem:[#allocation10 + $0xa8] sm:$0xff] }
  0xe0   : > { %1635 = vmatprep.subr.bf16.mxu0 %v2194_v4  ;;  %v647_v36 = vld [vmem:[#allocation10 + $0x70] sm:$0xff]  ;;  %v1615_v37 = vpack.c.bf16 %v655_v33, %v652_v32  ;;  %v650_v40 = vld [vmem:[#allocation10 + $0x88] sm:$0xff]  ;;  %v661_v42 = vld [vmem:[#allocation10 + $0xe0] sm:$0xff]  ;;  %s2611_s17 = scalar_lea.hbm %s2745_s5, %s1421_s6 }
  0xe1   : > { %1610 = vmatpush1.bf16.msra.mxu1 %v1609_v24  ;;  %v651_v38 = vld [vmem:[#allocation10 + $0x90] sm:$0xff]  ;;  %v658_v41 = vld [vmem:[#allocation10 + $0xc8] sm:$0xff]  ;;  %v1642_v44 = vpack.c.bf16 %v650_v40, %v647_v36  ;;  %v653_v45 = vld [vmem:[#allocation10 + $0xa0] sm:$0xff] }
  0xe2   : > { %1490 = vmatmul.mubr.msk.f32.vlgmr.msra.gmra.mrb[0].mxu0 %vm558_vm1, %v545_v23  ;;  %1612 = vmatprep.subr.bf16.mxu1 %v1611_v28  ;;  %v1617_v43 = vpack.c.bf16 %v654_v39, %v651_v38  ;;  %v1619_v46 = vpack.c.bf16 %v661_v42, %v658_v41  ;;  %v657_v47 = vld [vmem:[#allocation10 + $0xc0] sm:$0xff]  ;;  %v660_v48 = vld [vmem:[#allocation10 + $0xd8] sm:$0xff]  ;;  %v667_v51 = vld [vmem:[#allocation10 + $0x110] sm:$0xff] }
  0xe3   : > { %1637 = vmatpush3.bf16.msra.mxu0 %v1636_v26  ;;  %1524 = vmatprep.mubr.msk.f32.mxu0 %vm2195_vm0, %v2196_v7  ;;  %v656_v49 = vld [vmem:[#allocation10 + $0xb8] sm:$0xff]  ;;  %v1621_v52 = vpack.c.bf16 %v660_v48, %v657_v47  ;;  %v659_v54 = vld [vmem:[#allocation10 + $0xd0] sm:$0xff]  ;;  %v666_v57 = vld [vmem:[#allocation10 + $0x108] sm:$0xff] }
  0xe4   : > { %1638 = vmatprep.subr.bf16.mxu0 %v2194_v4  ;;  %v664_v50 = vld [vmem:[#allocation10 + $0xf8] sm:$0xff]  ;;  %v1645_v53 = vpack.c.bf16 %v656_v49, %v653_v45  ;;  %v663_v56 = vld [vmem:[#allocation10 + $0xf0] sm:$0xff]  ;;  %v662_v58 = vld [vmem:[#allocation10 + $0xe8] sm:$0xff] }
  0xe5   : > { %1614 = vmatpush1.bf16.msra.mxu1 %v1613_v34  ;;  %v1623_v55 = vpack.c.bf16 %v667_v51, %v664_v50  ;;  %v670_v59 = vld [vmem:[#allocation10 + $0x128] sm:$0xff]  ;;  %v673_v60 = vld [vmem:[#allocation10 + $0x140] sm:$0xff]  ;;  %v1625_v61 = vpack.c.bf16 %v666_v57, %v663_v56  ;;  %v1648_v62 = vpack.c.bf16 %v662_v58, %v659_v54  ;;  %v672_v1 = vld [vmem:[#allocation10 + $0x138] sm:$0xff] }
  0xe6   : > { %1616 = vmatprep.subr.bf16.mxu1 %v1615_v37  ;;  %v1627_v63 = vpack.c.bf16 %v673_v60, %v670_v59  ;;  %v669_v0 = vld [vmem:[#allocation10 + $0x120] sm:$0xff]  ;;  %v668_v3 = vld [vmem:[#allocation10 + $0x118] sm:$0xff]  ;;  %v671_v8 = vld [vmem:[#allocation10 + $0x130] sm:$0xff] }
  0xe7   : > { %1640 = vmatpush3.bf16.msra.mxu0 %v1639_v35  ;;  %v665_v2 = vld [vmem:[#allocation10 + $0x100] sm:$0xff]  ;;  %v1629_v5 = vpack.c.bf16 %v672_v1, %v669_v0  ;;  %v674_v9 = vld [vmem:[#allocation10 + $0x148] sm:$0xff]  ;;  %v676_v11 = vld [vmem:[#allocation10 + $0x158] sm:$0xff] }
  0xe8   : > { %1641 = vmatprep.subr.bf16.mxu0 %v2194_v4  ;;  %v1651_v6 = vpack.c.bf16 %v668_v3, %v665_v2  ;;  %v1654_v10 = vpack.c.bf16 %v674_v9, %v671_v8  ;;  %v679_v12 = vld [vmem:[#allocation10 + $0x170] sm:$0xff]  ;;  %v678_v15 = vld [vmem:[#allocation10 + $0x168] sm:$0xff]  ;;  %v677_v17 = vld [vmem:[#allocation10 + $0x160] sm:$0xff] }
  0xe9   : > { %1618 = vmatpush1.bf16.msra.mxu1 %v1617_v43  ;;  %v1631_v13 = vpack.c.bf16 %v679_v12, %v676_v11  ;;  %v675_v14 = vld [vmem:[#allocation10 + $0x150] sm:$0xff]  ;;  %v680_v18 = vld [vmem:[#allocation10 + $0x178] sm:$0xff]  ;;  %v840_v20 = vld [vmem:[#allocation12 + $0x8] sm:$0xff] }
  0xea   : > { %1620 = vmatprep.subr.bf16.mxu1 %v1619_v46  ;;  %v1633_v16 = vpack.c.bf16 %v678_v15, %v675_v14  ;;  %v1657_v19 = vpack.c.bf16 %v680_v18, %v677_v17  ;;  %v843_v21 = vld [vmem:[#allocation12 + $0x20] sm:$0xff]  ;;  %v842_v25 = vld [vmem:[#allocation12 + $0x18] sm:$0xff]  ;;  %v841_v26 = vld [vmem:[#allocation12 + $0x10] sm:$0xff] }
  0xeb   : > { %1643 = vmatpush3.bf16.msra.mxu0 %v1642_v44  ;;  %v1659_v22 = vpack.c.bf16 %v843_v21, %v840_v20  ;;  %v1416_v23 = vld [vmem:[%s2700_s4] ss:$0 sm:$0xff]  ;;  %v844_v27 = vld [vmem:[#allocation12 + $0x28] sm:$0xff]  ;;  %v846_v29 = vld [vmem:[#allocation12 + $0x38] sm:$0xff] }
  0xec   : > { %1644 = vmatprep.subr.bf16.mxu0 %v2194_v4  ;;  %v839_v24 = vld [vmem:[#allocation12] sm:$0xff]  ;;  %v849_v30 = vld [vmem:[#allocation12 + $0x50] sm:$0xff]  ;;  %v1692_v35 = vpack.c.bf16 %v844_v27, %v841_v26  ;;  %v848_v38 = vld [vmem:[#allocation12 + $0x48] sm:$0xff] }
  0xed   : > { %1622 = vmatpush1.bf16.msra.mxu1 %v1621_v52  ;;  %v1661_v33 = vpack.c.bf16 %v842_v25, %v839_v24  ;;  %v845_v34 = vld [vmem:[#allocation12 + $0x30] sm:$0xff]  ;;  %v1663_v37 = vpack.c.bf16 %v849_v30, %v846_v29  ;;  %v847_v39 = vld [vmem:[#allocation12 + $0x40] sm:$0xff]  ;;  %v850_v40 = vld [vmem:[#allocation12 + $0x58] sm:$0xff] }
  0xee   : > { %1624 = vmatprep.subr.bf16.mxu1 %v1623_v55  ;;  %v852_v41 = vld [vmem:[#allocation12 + $0x68] sm:$0xff]  ;;  %v855_v42 = vld [vmem:[#allocation12 + $0x80] sm:$0xff]  ;;  %v1665_v43 = vpack.c.bf16 %v848_v38, %v845_v34  ;;  %v1695_v45 = vpack.c.bf16 %v850_v40, %v847_v39  ;;  %v854_v47 = vld [vmem:[#allocation12 + $0x78] sm:$0xff] }
  0xef   : > { %1646 = vmatpush3.bf16.msra.mxu0 %v1645_v53  ;;  %v851_v44 = vld [vmem:[#allocation12 + $0x60] sm:$0xff]  ;;  %v1667_v46 = vpack.c.bf16 %v855_v42, %v852_v41  ;;  %v853_v48 = vld [vmem:[#allocation12 + $0x70] sm:$0xff]  ;;  %v856_v49 = vld [vmem:[#allocation12 + $0x88] sm:$0xff] }
  0xf0   : > { %1647 = vmatprep.subr.bf16.mxu0 %v2194_v4  ;;  %v858_v50 = vld [vmem:[#allocation12 + $0x98] sm:$0xff]  ;;  %v861_v51 = vld [vmem:[#allocation12 + $0xb0] sm:$0xff]  ;;  %v1669_v52 = vpack.c.bf16 %v854_v47, %v851_v44  ;;  %v1698_v54 = vpack.c.bf16 %v856_v49, %v853_v48  ;;  %v860_v56 = vld [vmem:[#allocation12 + $0xa8] sm:$0xff] }
  0xf1   : > { %1626 = vmatpush1.bf16.msra.mxu1 %v1625_v61  ;;  %v857_v53 = vld [vmem:[#allocation12 + $0x90] sm:$0xff]  ;;  %v1671_v55 = vpack.c.bf16 %v861_v51, %v858_v50  ;;  %v859_v57 = vld [vmem:[#allocation12 + $0xa0] sm:$0xff]  ;;  %v862_v58 = vld [vmem:[#allocation12 + $0xb8] sm:$0xff] }
  0xf2   : > { %1628 = vmatprep.subr.bf16.mxu1 %v1627_v63  ;;  %v864_v59 = vld [vmem:[#allocation12 + $0xc8] sm:$0xff]  ;;  %v867_v60 = vld [vmem:[#allocation12 + $0xe0] sm:$0xff]  ;;  %v1673_v61 = vpack.c.bf16 %v860_v56, %v857_v53  ;;  %v1701_v63 = vpack.c.bf16 %v862_v58, %v859_v57  ;;  %v866_v1 = vld [vmem:[#allocation12 + $0xd8] sm:$0xff] }
  0xf3   : > { %1649 = vmatpush3.bf16.msra.mxu0 %v1648_v62  ;;  %v863_v62 = vld [vmem:[#allocation12 + $0xc0] sm:$0xff]  ;;  %v1675_v0 = vpack.c.bf16 %v867_v60, %v864_v59  ;;  %v865_v2 = vld [vmem:[#allocation12 + $0xd0] sm:$0xff]  ;;  %v868_v3 = vld [vmem:[#allocation12 + $0xe8] sm:$0xff] }
  0xf4   : > { %1650 = vmatprep.subr.bf16.mxu0 %v2194_v4  ;;  %v1677_v8 = vpack.c.bf16 %v866_v1, %v863_v62  ;;  %v869_v9 = vld [vmem:[#allocation12 + $0xf0] sm:$0xff]  ;;  %v872_v12 = vld [vmem:[#allocation12 + $0x108] sm:$0xff]  ;;  %v874_v14 = vld [vmem:[#allocation12 + $0x118] sm:$0xff] }
  0xf5   : > { %1630 = vmatpush1.bf16.msra.mxu1 %v1629_v5  ;;  %v870_v5 = vld [vmem:[#allocation12 + $0xf8] sm:$0xff]  ;;  %v876_v15 = vld [vmem:[#allocation12 + $0x128] sm:$0xff]  ;;  %v1681_v17 = vpack.c.bf16 %v872_v12, %v869_v9  ;;  %v875_v18 = vld [vmem:[#allocation12 + $0x120] sm:$0xff] }
  0xf6   : > { %1632 = vmatprep.subr.bf16.mxu1 %v1631_v13  ;;  %v871_v13 = vld [vmem:[#allocation12 + $0x100] sm:$0xff]  ;;  %v878_v21 = vld [vmem:[#allocation12 + $0x138] sm:$0xff]  ;;  %v885_v25 = vld [vmem:[#allocation12 + $0x170] sm:$0xff] }
  0xf7   : > { %1652 = vmatpush3.bf16.msra.mxu0 %v1651_v6  ;;  %v873_v6 = vld [vmem:[#allocation12 + $0x110] sm:$0xff]  ;;  %v882_v24 = vld [vmem:[#allocation12 + $0x158] sm:$0xff]  ;;  %v1685_v26 = vpack.c.bf16 %v878_v21, %v875_v18  ;;  %v884_v30 = vld [vmem:[#allocation12 + $0x168] sm:$0xff] }
  0xf8   : > { %1653 = vmatprep.subr.bf16.mxu0 %v2194_v4  ;;  %v1679_v11 = vpack.c.bf16 %v873_v6, %v870_v5  ;;  %v881_v27 = vld [vmem:[#allocation12 + $0x150] sm:$0xff]  ;;  %v1687_v29 = vpack.c.bf16 %v885_v25, %v882_v24  ;;  %v1067_v40 = vld [vmem:[#allocation13 + $0x18] sm:$0xff]  ;;  %v1068_v42 = vld [vmem:[#allocation13 + $0x20] sm:$0xff] }
  0xf9   : > { %1634 = vmatpush1.bf16.msra.mxu1 %v1633_v16  ;;  %v879_v16 = vld [vmem:[#allocation12 + $0x140] sm:$0xff]  ;;  %v1066_v39 = vld [vmem:[#allocation13 + $0x10] sm:$0xff]  ;;  %v1073_v48 = vld [vmem:[#allocation13 + $0x48] sm:$0xff] }
  0xfa   : > { %1660 = vmatprep.subr.bf16.mxu1 %v1659_v22  ;;  %v1683_v20 = vpack.c.bf16 %v879_v16, %v876_v15  ;;  %v877_v22 = vld [vmem:[#allocation12 + $0x130] sm:$0xff]  ;;  %v1719_v41 = vpack.c.bf16 %v1067_v40, %v1066_v39  ;;  %v1072_v47 = vld [vmem:[#allocation13 + $0x40] sm:$0xff]  ;;  %v1075_v51 = vld [vmem:[#allocation13 + $0x58] sm:$0xff] }
  0xfb   : > { %1655 = vmatpush3.bf16.msra.mxu0 %v1654_v10  ;;  %v1704_v10 = vpack.c.bf16 %v868_v3, %v865_v2  ;;  %v1728_v49 = vpack.c.bf16 %v1073_v48, %v1072_v47  ;;  %v1074_v50 = vld [vmem:[#allocation13 + $0x50] sm:$0xff]  ;;  %v1076_v53 = vld [vmem:[#allocation13 + $0x60] sm:$0xff]  ;;  %v1079_v57 = vld [vmem:[#allocation13 + $0x78] sm:$0xff] }
  0xfc   : > { %1656 = vmatprep.subr.bf16.mxu0 %v2194_v4  ;;  %v1078_v56 = vld [vmem:[#allocation13 + $0x70] sm:$0xff]  ;;  %v681_v1 = vld [vmem:[%s2743_s28] sm:$0x7]  ;;  %s2197_s28 = smov [#allocation16]  }
  0xfd   : > { %v1737_v58 = vpack.c.bf16 %v1079_v57, %v1078_v56  ;;  %s2060_s13 = sshll.u32 %s2197_s28, 4  ;;  %s2061_s13 = int_to_ptr.vmem [resolvable:$false] %s2060_s13 }
  0xfe   : > { %s2062_s20 = scalar_lea.vmem %s2061_s13, 256 }
  0xff   : > { %1658 = vmatpush3.bf16.msra.mxu0 %v1657_v19  ;;  %v1707_v19 = vpack.c.bf16 %v874_v14, %v871_v13 }
 0x100   : > { %1691 = vmatprep.subr.bf16.mxu0 %v2194_v4 }
 0x1b5   : > { %v628_v28 = vpop.f32.mrb[0].mxu0 }
 0x1b6   : > { %v629_v31 = vadd.f32 %v1416_v23, %v628_v28  ;;  %v1491_v32 = vpop.f32.mrb[1].mxu0  ;;  %v880_v23 = vld [vmem:[#allocation12 + $0x148] sm:$0xff] }
 0x1b7   : > { %v1710_v28 = vpack.c.bf16 %v880_v23, %v877_v22  ;;  %v886_v32 = vld [vmem:[#allocation12 + $0x178] sm:$0xff] }
 0x1b8   : > { %v632_v36 = vmax.f32 %v629_v31, 0.0  ;;  %v883_v31 = vld [vmem:[#allocation12 + $0x160] sm:$0xff] }
 0x1b9   : > { %v1713_v34 = vpack.c.bf16 %v886_v32, %v883_v31 }
 0x1ba   : > { %763 = vmatmul.mubr.f32.vlgmr.msra.gmra.mrb[0].mxu1 %v632_v36  ;;  %1525 = vmatmul.mubr.f32.vlgmr.msra.gmra.mrb[2].mxu0 %v632_v36  ;;  %v1064_v36 = vld [vmem:[#allocation13] sm:$0xff] }
 0x1bb   : > { %1662 = vmatpush1.bf16.msra.mxu1 %v1661_v33  ;;  %1693 = vmatpush3.bf16.msra.mxu0 %v1692_v35  ;;  %v1689_v33 = vpack.c.bf16 %v884_v30, %v881_v27  ;;  %v2572_v35 = vld [vmem:[#allocation2] sm:$0xff] }
 0x1bc   : > { %1664 = vmatprep.subr.bf16.mxu1 %v1663_v37  ;;  %1694 = vmatprep.subr.bf16.mxu0 %v2194_v4  ;;  %v1065_v37 = vld [vmem:[#allocation13 + $0x8] sm:$0xff] }
 0x1bd   : > { %968 = vmatprep.mubr.f32.mxu1 %v2196_v7  ;;  %1559 = vmatprep.mubr.msk.f32.mxu0 %vm2195_vm0, %v2196_v7  ;;  %v1716_v38 = vpack.c.bf16 %v1065_v37, %v1064_v36 }
 0x1bf   : > { %1666 = vmatpush1.bf16.msra.mxu1 %v1665_v43  ;;  %1696 = vmatpush3.bf16.msra.mxu0 %v1695_v45  ;;  %v1069_v43 = vld [vmem:[#allocation13 + $0x28] sm:$0xff]  ;;  %v1070_v45 = vld [vmem:[#allocation13 + $0x30] sm:$0xff] }
 0x1c0   : > { %1668 = vmatprep.subr.bf16.mxu1 %v1667_v46  ;;  %1697 = vmatprep.subr.bf16.mxu0 %v2194_v4  ;;  %v1722_v44 = vpack.c.bf16 %v1069_v43, %v1068_v42 }
 0x1c3   : > { %1670 = vmatpush1.bf16.msra.mxu1 %v1669_v52  ;;  %1699 = vmatpush3.bf16.msra.mxu0 %v1698_v54  ;;  %v1731_v52 = vpack.c.bf16 %v1075_v51, %v1074_v50  ;;  %v1077_v54 = vld [vmem:[#allocation13 + $0x68] sm:$0xff] }
 0x1c4   : > { %1672 = vmatprep.subr.bf16.mxu1 %v1671_v55  ;;  %1700 = vmatprep.subr.bf16.mxu0 %v2194_v4  ;;  %v1734_v55 = vpack.c.bf16 %v1077_v54, %v1076_v53 }
 0x1c7   : > { %1674 = vmatpush1.bf16.msra.mxu1 %v1673_v61  ;;  %1702 = vmatpush3.bf16.msra.mxu0 %v1701_v63  ;;  %v683_v61 = vlaneseq }
 0x1c8   : > { %1676 = vmatprep.subr.bf16.mxu1 %v1675_v0  ;;  %1703 = vmatprep.subr.bf16.mxu0 %v2194_v4  ;;  %v887_v0 = vld [vmem:[%s2742_s10] sm:$0x7]  ;;  %s1232_s10 = sshll.u32 %s537_s16, 4  ;;  %s1233_s10 = int_to_ptr.vmem [resolvable:$true] %s1232_s10 }
 0x1c9   : > { %v684_v62 = vshrl.u32 %v683_v61, 7  ;;  %v2595_v37 = vand.u32 127, %v683_v61  ;;  %s2056_s11 = scalar_lea.vmem %s1233_s10, 128  ;;  %p2063_p12 = scmp.lt.s32.totalorder %s1233_s10, %s2061_s13 }
 0x1ca   : > { %p2057_p2 = scmp.ne.s32.totalorder %s1233_s10, %s2056_s11  ;;  %p2064_p0 = scmp.lt.s32.totalorder %s2062_s20, %s2056_s11 }
 0x1cb   : > { %1678 = vmatpush1.bf16.msra.mxu1 %v1677_v8  ;;  %1705 = vmatpush3.bf16.msra.mxu0 %v1704_v10  ;;  %v685_v63 = vsub.s32 0, %v684_v62  ;;  %v689_v2 = vsub.s32 1, %v684_v62  ;;  %v693_v18 = vsub.s32 2, %v684_v62  ;;  %vm1163_vm2 = vcmp.ge.s32.totalorder %v2595_v37, 8 }
 0x1cc   : > { %1680 = vmatprep.subr.bf16.mxu1 %v1679_v11  ;;  %1706 = vmatprep.subr.bf16.mxu0 %v2194_v4  ;;  %vm1164_vm3 = vcmp.lt.s32.totalorder %v2595_v37, 16  ;;  %p2058_p6 = pnand %p2057_p2, %p2746_p4  ;;  %p2065_p7 = por %p2064_p0, %p2063_p12 }
 0x1cd   : > { %v686_v3 = vrot.slane %v681_v1, %v685_v63  ;;  %v892_v5 = vrot.slane %v887_v0, %v685_v63  ;;  %v690_v6 = vrot.slane %v681_v1, %v689_v2  ;;  %v896_v8 = vrot.slane %v887_v0, %v689_v2  ;;  %vm1165_vm4 = vmand %vm1163_vm2, %vm1164_vm3 }
 0x1ce   : > { %v694_v21 = vrot.slane %v681_v1, %v693_v18  ;;  %p2059_p11 = pneg %p2058_p6 }
 0x1cf   : > { %1682 = vmatpush1.bf16.msra.mxu1 %v1681_v17  ;;  %1708 = vmatpush3.bf16.msra.mxu0 %v1707_v19  ;;  %v1741_v10 = vadd.f32 %v896_v8, %v690_v6  ;;  %v900_v19 = vrot.slane %v887_v0, %v693_v18 }
 0x1d0   : > { %1684 = vmatprep.subr.bf16.mxu1 %v1683_v20  ;;  %1709 = vmatprep.subr.bf16.mxu0 %v2194_v4  ;;  %p2066_p8 = pnand %p2065_p7, %p2059_p11 }
 0x1d3   : > { %1686 = vmatpush1.bf16.msra.mxu1 %v1685_v26  ;;  %1711 = vmatpush3.bf16.msra.mxu0 %v1710_v28 }
 0x1d4   : > { %1688 = vmatprep.subr.bf16.mxu1 %v1687_v29  ;;  %1712 = vmatprep.subr.bf16.mxu0 %v2194_v4 }
 0x1d7   : > { %1690 = vmatpush1.bf16.msra.mxu1 %v1689_v33  ;;  %1714 = vmatpush3.bf16.msra.mxu0 %v1713_v34 }
 0x1d8   : > { %1715 = vmatprep.subr.bf16.mxu1 %v2194_v4 }
 0x1da   : > { %969 = vmatmul.mubr.f32.vlgmr.msra.gmra.mrb[0].mxu1 %v2572_v35  ;;  %1560 = vmatmul.mubr.f32.vlgmr.msra.gmra.mrb[4].mxu0 %v2572_v35 }
 0x1db   : > { %1594 = vmatprep.mubr.msk.f32.mxu1 %vm2195_vm0, %v2196_v7  ;;  %1717 = vmatpush3.bf16.msra.mxu1 %v1716_v38  ;;  %v1071_v7 = vld [vmem:[#allocation13 + $0x38] sm:$0xff]  ;;  %v1418_v38 = vld [vmem:[%s2744_s18] ss:$0 sm:$0xff] }
 0x1dc   : > { %1718 = vmatprep.subr.bf16.mxu1 %v2194_v4  ;;  %v1725_v46 = vpack.c.bf16 %v1071_v7, %v1070_v45 }
 0x1df   : > { %1720 = vmatpush3.bf16.msra.mxu1 %v1719_v41 }
 0x1e0   : > { %1721 = vmatprep.subr.bf16.mxu1 %v2194_v4 }
 0x1e3   : > { %1723 = vmatpush3.bf16.msra.mxu1 %v1722_v44 }
 0x1e4   : > { %1724 = vmatprep.subr.bf16.mxu1 %v2194_v4 }
 0x1e7   : > { %1726 = vmatpush3.bf16.msra.mxu1 %v1725_v46 }
 0x1e8   : > { %1727 = vmatprep.subr.bf16.mxu1 %v2194_v4 }
 0x1eb   : > { %1729 = vmatpush3.bf16.msra.mxu1 %v1728_v49 }
 0x1ec   : > { %1730 = vmatprep.subr.bf16.mxu1 %v2194_v4 }
 0x1ef   : > { %1732 = vmatpush3.bf16.msra.mxu1 %v1731_v52 }
 0x1f0   : > { %1733 = vmatprep.subr.bf16.mxu1 %v2194_v4 }
 0x1f3   : > { %1735 = vmatpush3.bf16.msra.mxu1 %v1734_v55 }
 0x1f4   : > { %1736 = vmatprep.subr.bf16.mxu1 %v2194_v4  ;;  %v1739_v4 = vadd.f32 %v892_v5, %v686_v3 }
 0x1f7   : > { %1738 = vmatpush3.bf16.msra.mxu1 %v1737_v58 }
 0x28d   : > { %v835_v59 = vpop.f32.mrb[2].mxu0 }
 0x28e   : > { %v1526_v60 = vpop.f32.mrb[3].mxu0  ;;  %v836_v25 = vadd.f32 %v835_v59, %v694_v21 }
 0x2ad   : > { %v970_v9 = vpop.f32.mrb[0].mxu1  ;;  %v1041_v11 = vpop.f32.mrb[4].mxu0 }
 0x2ae   : > { %v1740_v12 = vadd.f32 %v1739_v4, %v970_v9  ;;  %v972_v13 = vpop.f32.mrb[1].mxu1  ;;  %v1561_v14 = vpop.f32.mrb[5].mxu0  ;;  %v1042_v23 = vadd.f32 %v1041_v11, %v900_v19 }
 0x2af   : > { %v1742_v16 = vadd.f32 %v1741_v10, %v972_v13 }
 0x2b0   : > { %v1046_v15 = vmul.f32 0.5, %v1740_v12 }
 0x2b1   : > { %v1051_v17 = vmul.f32 0.5, %v1742_v16 }
 0x2b2   : > { %1870 = vtanh.f32 %v1046_v15 }
 0x2b3   : > { %1872 = vtanh.f32 %v1051_v17 }
 0x2bc   : > { %v1871_v20 = vpop.eup %1870 }
 0x2bd   : > { %v1048_v22 = vmul.f32 0.5, %v1871_v20  ;;  %v1873_v27 = vpop.eup %1872 }
 0x2be   : > { %v1053_v29 = vmul.f32 0.5, %v1873_v27 }
 0x2bf   : > { %v1049_v24 = vadd.f32 0.5, %v1048_v22 }
 0x2c0   : > { %v1054_v30 = vadd.f32 0.5, %v1053_v29 }
 0x2c1   : > { %v1055_v26 = vmul.f32 %v1049_v24, %v1042_v23 }
 0x2c2   : > { %v1058_v31 = vsub.f32 1.0, %v1054_v30  ;;  %v1060_v33 = vmul.f32 %v1054_v30, %v2572_v35 }
 0x2c3   : > { %v1056_v28 = vadd.f32 %v1055_v26, %v836_v25 }
 0x2c5   : > { %1874 = vtanh.f32 %v1056_v28 }
 0x2cf   : > { %v1875_v32 = vpop.eup %1874 }
 0x2d0   : > { %v1059_v34 = vmul.f32 %v1875_v32, %v1058_v31 }
 0x2d2   : > { %v1061_v36 = vadd.f32 %v1060_v33, %v1059_v34 }
 0x2d4   : > { %1062 = vst [vmem:[#allocation2] sm:$0xff] %v1061_v36  ;;  %1595 = vmatmul.mubr.f32.vlgmr.msra.gmra.mrb[2].mxu1 %v1061_v36  ;;  %1063 = vst [vmem:[%s537_s16] sm:$0xff] %v1061_v36 }
 0x3a7   : > { %v1153_v35 = vpop.f32.mrb[2].mxu1 }
 0x3a8   : > { %v2602_v39 = vadd.f32 %v1418_v38, %v1153_v35  ;;  %v1596_v40 = vpop.f32.mrb[3].mxu1 }
 0x3aa   : > { %v1184_v41 = vsel %vm1165_vm4, %v2602_v39, -1e+30 }
 0x3ab   : > { %1185 = vmax.xlane.f32.xlu0 %v1184_v41 }
 0x438   : > { %v1186_v42 = vpop.xlane.xlu0 %1185 }
 0x439   : > { %v1187_v43 = vsub.f32 %v1184_v41, %v1186_v42 }
 0x43b   : > { %v1188_v44 = vmul.f32 1.442695, %v1187_v43 }
 0x43d   : > { %1876 = vpow2.f32 %v1188_v44 }
 0x447   : > { %v1877_v45 = vpop.eup %1876 }
 0x448   : > { %v1190_v7 = vsel %vm1165_vm4, %v1877_v45, 0.0 }
 0x449   : > { %1191 = vadd.xlane.f32.xlu0 %v1190_v7 }
 0x44a   : > { %2069 = shalt.err (!%p2066_p8)
}
 0x44b   : > { %s2070_s16 = scalar_lea.hbm %s2611_s17, 128  ;;  %s2074_s19 = scalar_lea.hbm %s2745_s5, 1024 }
 0x44c   : > { %p2071_p1 = scmp.ne.s32.totalorder %s2611_s17, %s2070_s16  ;;  %p2075_p9 = scmp.lt.u32.totalorder %s2611_s17, %s2745_s5 }
 0x44d   : > { %p2076_p13 = scmp.lt.u32.totalorder %s2074_s19, %s2070_s16  ;;  %p2078_p2 = scmp.lt.u32.totalorder %s2070_s16, %s2611_s17 }
 0x44e   : > { %p2072_p3 = pnand %p2071_p1, %p2746_p4 }
 0x44f   : > { %p2077_p5 = por %p2076_p13, %p2075_p9 }
 0x450   : > { %p2073_p10 = pneg %p2072_p3 }
 0x451   : > { %p2079_p6 = por %p2078_p2, %p2077_p5 }
 0x453   : > { %p2080_p11 = pnand %p2079_p6, %p2073_p10 }
 0x455   : > { %2083 = shalt.err (!%p2080_p11)
}
 0x456   : > { %1768 = dma.vmem_to_hbm [thread:$0]  (%p2746_p4), %s1233_s10, 128, %s2611_s17, %s1204_s14   ;;  %v1170_v46 = vand.u32 2147483647, %v2602_v39  ;;  %vm1160_vm5 = vcmp.ge.s32.totalorder %v2595_v37, 4  ;;  %vm1161_vm6 = vcmp.lt.s32.totalorder %v2595_v37, 8  ;;  %v1169_v60 = vmax.f32 %v2602_v39, 0.0 }
 0x457   : > { %s544_s11 = sld [smem:[#allocation3]]  ;;  %vm1162_vm8 = vmand %vm1160_vm5, %vm1161_vm6  ;;  %s1218_s17 = sshll.u32 %s530_s30, 4  ;;  %vm1159_vm9 = vcmp.lt.s32.totalorder %v2595_v37, 4  ;;  %s2648_s17 = int_to_ptr.vmem [resolvable:$true] %s1218_s17 }
 0x458   : > { %v1171_v47 = vsub.f32 0.0, %v1170_v46  ;;  %s2747_s20 = sld [smem:[#allocation29_spill]]  ;;  %s1199_s18 = scalar_lea.sflag [#allocation6], %s2515_s21 }
 0x459   : > { %s2084_s29 = scalar_lea.vmem %s2648_s17, 128  ;;  %s2198_s26 = smov [#allocation15]  }
 0x45a   : > { %v1172_v48 = vmul.f32 1.442695, %v1171_v47  ;;  %p2085_p12 = scmp.ne.s32.totalorder %s2648_s17, %s2084_s29  ;;  %s2088_s19 = sshll.u32 %s2198_s26, 4  ;;  %s2089_s19 = int_to_ptr.vmem [resolvable:$false] %s2088_s19 }
 0x45b   : > { %s2090_s28 = scalar_lea.vmem %s2089_s19, 256  ;;  %p2091_p8 = scmp.lt.s32.totalorder %s2648_s17, %s2089_s19 }
 0x45c   : > { %1878 = vpow2.f32 %v1172_v48  ;;  %p2086_p0 = pnand %p2085_p12, %p2746_p4  ;;  %p2092_p1 = scmp.lt.s32.totalorder %s2090_s28, %s2084_s29 }
 0x45d   : > { %v1167_v61 = vstv %s544_s11 }
 0x45e   : > { %s2646_s16 = scalar_lea.hbm %s2747_s20, %s1421_s6  ;;  %p2087_p7 = pneg %p2086_p0 }
 0x45f   : > { %p2093_p3 = por %p2092_p1, %p2091_p8 }
 0x461   : > { %p2094_p10 = pnand %p2093_p3, %p2087_p7 }
 0x466   : > { %v1879_v49 = vpop.eup %1878 }
 0x467   : > { %v1174_v50 = vadd.f32 1.0, %v1879_v49  ;;  %v1177_v51 = vmul.f32 -0.5, %v1879_v49  ;;  %v1180_v55 = vand.u32 2147483647, %v1879_v49 }
 0x469   : > { %1880 = vlog2.f32 %v1174_v50  ;;  %v1178_v54 = vadd.f32 1.0, %v1177_v51  ;;  %vm1181_vm7 = vcmp.lt.f32.partialorder %v1180_v55, 0.0004427343 }
 0x46a   : > { %1882 = vtanh.f32 %v2602_v39 }
 0x46b   : > { %v1179_v57 = vmul.f32 %v1879_v49, %v1178_v54 }
 0x473   : > { %v1881_v53 = vpop.eup %1880 }
 0x474   : > { %v1176_v56 = vmul.f32 0.6931472, %v1881_v53  ;;  %v1883_v59 = vpop.eup %1882 }
 0x475   : > { %v1168_v1 = vmul.f32 %v1883_v59, %v1167_v61 }
 0x476   : > { %v1182_v58 = vsel %vm1181_vm7, %v1179_v57, %v1176_v56 }
 0x477   : > { %v1183_v63 = vadd.f32 %v1182_v58, %v1169_v60 }
 0x4d6   : > { %v1192_v52 = vpop.xlane.xlu0 %1191 }
 0x4d7   : > { %1884 = vrcp.f32 %v1192_v52 }
 0x4e1   : > { %v1885_v62 = vpop.eup %1884 }
 0x4e2   : > { %v1194_v0 = vmul.f32 %v1885_v62, %v1190_v7 }
 0x4e4   : > { %v1195_v2 = vsel %vm1162_vm8, %v1183_v63, %v1194_v0 }
 0x4e5   : > { %v1196_v3 = vsel %vm1159_vm9, %v1168_v1, %v1195_v2 }
 0x4e6   : > { %1197 = vst [vmem:[%s530_s30] sm:$0xff] %v1196_v3 }
 0x4e7   : > { %2097 = shalt.err (!%p2094_p10)
}
 0x4e8   : > { %s2098_s21 = scalar_lea.hbm %s2646_s16, 128  ;;  %s2102_s6 = scalar_lea.hbm %s2747_s20, 1024 }
 0x4e9   : > { %p2099_p9 = scmp.ne.s32.totalorder %s2646_s16, %s2098_s21  ;;  %p2103_p2 = scmp.lt.u32.totalorder %s2646_s16, %s2747_s20 }
 0x4ea   : > { %p2104_p6 = scmp.lt.u32.totalorder %s2102_s6, %s2098_s21  ;;  %p2106_p12 = scmp.lt.u32.totalorder %s2098_s21, %s2646_s16 }
 0x4eb   : > { %p2100_p13 = pnand %p2099_p9, %p2746_p4 }
 0x4ec   : > { %p2105_p11 = por %p2104_p6, %p2103_p2 }
 0x4ed   : > { %p2101_p5 = pneg %p2100_p13 }
 0x4ee   : > { %p2107_p0 = por %p2106_p12, %p2105_p11 }
 0x4f0   : > { %p2108_p7 = pnand %p2107_p0, %p2101_p5 }
 0x4f2   : > { %2111 = shalt.err (!%p2108_p7)
}
 0x4f3   : > { %1767 = dma.vmem_to_hbm [thread:$0]  (%p2746_p4), %s2648_s17, 128, %s2646_s16, %s1199_s18  }
 0x4f4 PF: > { %p1809_p8 = scmp.ge.s32.totalorder %s2182_s0, 2  ;;  %s1244_s10 = sand.u32 1, %s2162_s23  }
 0x4f5   : > { %p2748_p1 = scmp.ne.s32.totalorder %s2738_s2, 0  ;;  %s1245_s14 = scalar_lea.sflag [#allocation6], %s1244_s10 }
 0x4f7   : > { %p1792_p3 = pnand %p1809_p8, %p2748_p1 }
 0x4f9   : > { %2153 = dma.done.wait (!%p1792_p3), %s1245_s14, 128  }
 0x4fa   : > { %2155 = vsyncadd (!%p1792_p3), %s1245_s14, 4294967168  ;;  %s1254_s29 = scalar_lea.sflag [#allocation17], %s1244_s10 }
 0x4fb   : > { %2157 = dma.done.wait (!%p1792_p3), %s1254_s29, 128  }
 0x4fc   : > { %2159 = vsyncadd (!%p1792_p3), %s1254_s29, 4294967168  ;;  %s36_s0 = sadd.s32 1, %s2182_s0   ;;  %s2749_s23 = smov %s2166_s24 }
 0x4fd   : > { %p33_p10 = scmp.ge.s32.totalorder %s36_s0, 10   ;;  %s2750_s24 = smov %s2170_s25 }
 0x4fe   : > { %s2751_s25 = smov %s2466_s12  ;;  %s2752_s26 = smov %s2178_s27 }
 0x4ff   : > { %s2753_s27 = smov %s2755_s15  ;;  %35 = sbr.rel (!%p33_p10) target bundleno = 20 (0x14), region = 151 }
 0x506   :  { %1259 = vsyncpa [#allocation5], 1 }
 0x507   :  { %1261 = vsyncpa [#allocation5 + $0x1], 1 }
 0x508   :  { %1262 = vsyncpa [#allocation8], 1 }
 0x509   :  { %1263 = vsyncpa [#allocation11], 1 }
 0x50a   :  { %1264 = vsyncpa [#allocation14], 1 }
 0x50b   :  { %1265 = vsyncpa [#allocation6], 1 }
 0x50c   :  { %1267 = vsyncpa [#allocation6 + $0x1], 1 }
 0x50d   :  { %1268 = vsyncpa [#allocation17], 1 }
 0x50e   :  { %1270 = vsyncpa [#allocation17 + $0x1], 1 }

</bundles_post_ra>
